<compile_context>
chip_gen: v5e
topology: v5e:2x2
jax: 0.10.0
libtpu: 0.0.40
codegen_flags: <defaults>
</compile_context>

<pallas_src>
import jax
import jax.numpy as jnp
import numpy as np
from jax.experimental import pallas as pl
from jax.experimental.pallas import tpu as pltpu


def lstm_fused_kernel(
    x_ref,      # (B, T, D)   full input sequence, batch_first
    w0_ref,     # (D+H, 4H)   [W_ih0; W_hh0] fused
    b0_ref,     # (1, 4H)     b_ih0 + b_hh0
    w1_ref,     # (2H, 4H)    [W_ih1; W_hh1] fused
    b1_ref,     # (1, 4H)     b_ih1 + b_hh1
    wfc_ref,    # (H, O)
    bfc_ref,    # (1, O)
    out_ref,    # (B, O)
    xh0_sc,     # VMEM (B, D+H)  [x_t, h0] staging
    xh1_sc,     # VMEM (B, 2H)   [h0, h1] staging
):
    B, T, D = x_ref.shape
    H4 = w0_ref.shape[1]
    H = H4 // 4

    # ---- hoisted loads: weights once, bias broadcast once (JAX doesn't CSE
    # broadcast_in_dim, so do it outside the unrolled time loop). ------------
    w0 = w0_ref[...]                                   # (D+H, 4H)
    w1 = w1_ref[...]                                   # (2H, 4H)
    wfc = wfc_ref[...]                                 # (H, O)
    b0 = jnp.broadcast_to(b0_ref[...], (B, H4))        # (B, 4H)
    b1 = jnp.broadcast_to(b1_ref[...], (B, H4))        # (B, 4H)

    def lstm_gates(gates, c):
        # PyTorch gate order: i, f, g, o
        i = jax.nn.sigmoid(gates[:, 0 * H:1 * H])
        f = jax.nn.sigmoid(gates[:, 1 * H:2 * H])
        g = jnp.tanh(gates[:, 2 * H:3 * H])
        o = jax.nn.sigmoid(gates[:, 3 * H:4 * H])
        c_new = f * c + i * g
        h_new = o * jnp.tanh(c_new)
        return h_new, c_new

    zeros = jnp.zeros((B, H), jnp.float32)
    h0, c0, h1, c1 = zeros, zeros, zeros, zeros

    # T is a static Python int -> fully unrolled in-kernel recurrence
    # (single kernel invocation; no per-step grid overhead).
    for t in range(T):
        # ---- layer 0: gates0 = [x_t, h0] @ [W_ih0; W_hh0] + b0  (one MXU dot)
        xh0_sc[:, :D] = x_ref[:, t, :]
        xh0_sc[:, D:] = h0
        g0 = jnp.dot(xh0_sc[...], w0, preferred_element_type=jnp.float32) + b0
        h0, c0 = lstm_gates(g0, c0)

        # ---- layer 1 (eval mode: no dropout applied to h0) ------------------
        xh1_sc[:, :H] = h0
        xh1_sc[:, H:] = h1
        g1 = jnp.dot(xh1_sc[...], w1, preferred_element_type=jnp.float32) + b1
        h1, c1 = lstm_gates(g1, c1)

    # ---- fc head on the last hidden state (one-time write) -----------------
    out_ref[...] = (
        jnp.dot(h1, wfc, preferred_element_type=jnp.float32) + bfc_ref[...]
    )


def lstm_model_forward(x, params):
    """x: (B, T, D) float32 (batch_first, like the PyTorch module).
    Returns (B, output_dim) float32."""
    B, T, D = x.shape
    w0, b0, w1, b1, wfc, bfc = params
    H = w1.shape[0] // 2
    O = wfc.shape[1]

    def vmem():
        return pl.BlockSpec(memory_space=pltpu.MemorySpace.VMEM)

    return pl.pallas_call(
        lstm_fused_kernel,
        out_shape=jax.ShapeDtypeStruct((B, O), jnp.float32),
        in_specs=[vmem() for _ in range(7)],
        out_specs=vmem(),
        scratch_shapes=[
            pltpu.VMEM((B, D + H), jnp.float32),   # [x_t, h0] staging
            pltpu.VMEM((B, 2 * H), jnp.float32),   # [h0, h1] staging
        ],
    )(x, w0, b0, w1, b1, wfc, bfc)


def init_params(key, input_dim, hidden_dim, output_dim):
    """Deterministic init, mimicking PyTorch's U(-1/sqrt(H), 1/sqrt(H))."""
    H = hidden_dim
    k = 1.0 / np.sqrt(H)
    keys = jax.random.split(key, 10)
    u = lambda kk, shape: jax.random.uniform(kk, shape, jnp.float32, -k, k)

    # PyTorch stores W_ih (4H, in), W_hh (4H, H).
    w_ih0 = u(keys[0], (4 * H, input_dim))
    w_hh0 = u(keys[1], (4 * H, H))
    b_ih0 = u(keys[2], (4 * H,))
    b_hh0 = u(keys[3], (4 * H,))
    w_ih1 = u(keys[4], (4 * H, H))
    w_hh1 = u(keys[5], (4 * H, H))
    b_ih1 = u(keys[6], (4 * H,))
    b_hh1 = u(keys[7], (4 * H,))
    w_fc = u(keys[8], (output_dim, H))
    b_fc = u(keys[9], (output_dim,))

    # Fused per-layer weights: [x, h] @ [W_ih; W_hh]^T == x @ W_ih^T + h @ W_hh^T
    params = (
        jnp.concatenate([w_ih0.T, w_hh0.T], axis=0),   # (D+H, 4H)
        (b_ih0 + b_hh0).reshape(1, 4 * H),             # (1, 4H)
        jnp.concatenate([w_ih1.T, w_hh1.T], axis=0),   # (2H, 4H)
        (b_ih1 + b_hh1).reshape(1, 4 * H),             # (1, 4H)
        w_fc.T,                                        # (H, O)
        b_fc.reshape(1, output_dim),                   # (1, O)
    )
    raw = dict(w_ih0=w_ih0, w_hh0=w_hh0, b_ih0=b_ih0, b_hh0=b_hh0,
               w_ih1=w_ih1, w_hh1=w_hh1, b_ih1=b_ih1, b_hh1=b_hh1,
               w_fc=w_fc, b_fc=b_fc)
    return params, raw


def reference_forward(x, raw, hidden_dim):
    """Pure-JAX reference of the PyTorch LSTMModel forward (eval mode)."""
    B, T, D = x.shape
    H = hidden_dim

    def cell(x_t, h, c, w_ih, w_hh, b_ih, b_hh):
        g = x_t @ w_ih.T + b_ih + h @ w_hh.T + b_hh
        i = jax.nn.sigmoid(g[:, :H])
        f = jax.nn.sigmoid(g[:, H:2 * H])
        gg = jnp.tanh(g[:, 2 * H:3 * H])
        o = jax.nn.sigmoid(g[:, 3 * H:])
        c_new = f * c + i * gg
        h_new = o * jnp.tanh(c_new)
        return h_new, c_new

    h0 = jnp.zeros((B, H), jnp.float32)
    c0 = jnp.zeros((B, H), jnp.float32)
    h1 = jnp.zeros((B, H), jnp.float32)
    c1 = jnp.zeros((B, H), jnp.float32)
    for t in range(T):
        x_t = x[:, t, :]
        h0, c0 = cell(x_t, h0, c0, raw["w_ih0"], raw["w_hh0"],
                      raw["b_ih0"], raw["b_hh0"])
        h1, c1 = cell(h0, h1, c1, raw["w_ih1"], raw["w_hh1"],
                      raw["b_ih1"], raw["b_hh1"])
    return h1 @ raw["w_fc"].T + raw["b_fc"]


if __name__ == "__main__":
    # Small shapes consistent with the module: (batch, seq, input_dim)
    B, T, D = 2, 8, 4
    HIDDEN, OUT = 32, 1

    key = jax.random.PRNGKey(0)
    kx, kp = jax.random.split(key)
    x = jax.random.normal(kx, (B, T, D), jnp.float32)

    params, raw = init_params(kp, D, HIDDEN, OUT)

    out = lstm_model_forward(x, params)
    out = jax.block_until_ready(out)

    ref = reference_forward(x, raw, HIDDEN)
    np.testing.assert_allclose(np.asarray(out), np.asarray(ref),
                               rtol=2e-5, atol=2e-5)
    print("KERNEL_OK")
</pallas_src>

<mosaic_0001>
module attributes {stable_mosaic.version = 11 : i64} {
  func.func @lstm_fused_kernel(%arg0: memref<2x8x4xf32, #tpu.memory_space<vmem>>, %arg1: memref<36x128xf32, #tpu.memory_space<vmem>>, %arg2: memref<1x128xf32, #tpu.memory_space<vmem>>, %arg3: memref<64x128xf32, #tpu.memory_space<vmem>>, %arg4: memref<1x128xf32, #tpu.memory_space<vmem>>, %arg5: memref<32x1xf32, #tpu.memory_space<vmem>>, %arg6: memref<1x1xf32, #tpu.memory_space<vmem>>, %arg7: memref<2x1xf32, #tpu.memory_space<vmem>>, %arg8: memref<2x36xf32, #tpu.memory_space<vmem>>, %arg9: memref<2x64xf32, #tpu.memory_space<vmem>>) attributes {dimension_semantics = [], scalar_prefetch = 0 : i64, scratch_operands = 2 : i64, tpu.core_type = #tpu.core_type<tc>} {
    %c0 = arith.constant 0 : index
    %c0_0 = arith.constant 0 : index
    %0 = vector.load %arg1[%c0, %c0_0] : memref<36x128xf32, #tpu.memory_space<vmem>>, vector<36x128xf32>
    %c0_1 = arith.constant 0 : index
    %c0_2 = arith.constant 0 : index
    %1 = vector.load %arg3[%c0_1, %c0_2] : memref<64x128xf32, #tpu.memory_space<vmem>>, vector<64x128xf32>
    %c0_3 = arith.constant 0 : index
    %c0_4 = arith.constant 0 : index
    %2 = vector.load %arg5[%c0_3, %c0_4] : memref<32x1xf32, #tpu.memory_space<vmem>>, vector<32x1xf32>
    %c0_5 = arith.constant 0 : index
    %c0_6 = arith.constant 0 : index
    %3 = vector.load %arg2[%c0_5, %c0_6] : memref<1x128xf32, #tpu.memory_space<vmem>>, vector<1x128xf32>
    %4 = vector.shape_cast %3 : vector<1x128xf32> to vector<1x128xf32>
    %5 = vector.broadcast %4 : vector<1x128xf32> to vector<2x128xf32>
    %c0_7 = arith.constant 0 : index
    %c0_8 = arith.constant 0 : index
    %6 = vector.load %arg4[%c0_7, %c0_8] : memref<1x128xf32, #tpu.memory_space<vmem>>, vector<1x128xf32>
    %7 = vector.shape_cast %6 : vector<1x128xf32> to vector<1x128xf32>
    %8 = vector.broadcast %7 : vector<1x128xf32> to vector<2x128xf32>
    %cst = arith.constant 0.000000e+00 : f32
    %9 = vector.broadcast %cst : f32 to vector<2x32xf32>
    %c0_9 = arith.constant 0 : index
    %c0_10 = arith.constant 0 : index
    %c0_11 = arith.constant 0 : index
    %10 = vector.load %arg0[%c0_9, %c0_10, %c0_11] : memref<2x8x4xf32, #tpu.memory_space<vmem>>, vector<2x1x4xf32>
    %11 = vector.shape_cast %10 : vector<2x1x4xf32> to vector<2x4xf32>
    %c0_12 = arith.constant 0 : index
    %c0_13 = arith.constant 0 : index
    %12 = vector.load %arg8[%c0_12, %c0_13] : memref<2x36xf32, #tpu.memory_space<vmem>>, vector<2x4xf32>
    tpu.vector_store %arg8[%c0_12, %c0_13], %11 {strides = array<i32>} : memref<2x36xf32, #tpu.memory_space<vmem>>, vector<2x4xf32>,
    %c0_14 = arith.constant 0 : index
    %c4 = arith.constant 4 : index
    %13 = vector.load %arg8[%c0_14, %c4] : memref<2x36xf32, #tpu.memory_space<vmem>>, vector<2x32xf32>
    tpu.vector_store %arg8[%c0_14, %c4], %9 {strides = array<i32>} : memref<2x36xf32, #tpu.memory_space<vmem>>, vector<2x32xf32>,
    %c0_15 = arith.constant 0 : index
    %c0_16 = arith.constant 0 : index
    %14 = vector.load %arg8[%c0_15, %c0_16] : memref<2x36xf32, #tpu.memory_space<vmem>>, vector<2x36xf32>
    %cst_17 = arith.constant dense<0.000000e+00> : vector<2x128xf32>
    %15 = tpu.matmul %14, %0, %cst_17 {dimension_numbers = #tpu.dot_dimension_numbers<[1], [0], [0], [1], [0, 0, 1, 1], [], []>} : vector<2x36xf32>, vector<36x128xf32>, vector<2x128xf32> -> vector<2x128xf32>
    %16 = arith.addf %15, %5 : vector<2x128xf32>
    %17 = vector.extract_strided_slice %16 {offsets = [0, 0], sizes = [2, 32], strides = [1, 1]} : vector<2x128xf32> to vector<2x32xf32>
    %18 = arith.negf %17 : vector<2x32xf32>
    %19 = math.exp %18 : vector<2x32xf32>
    %cst_18 = arith.constant 1.000000e+00 : f32
    %20 = vector.broadcast %cst_18 : f32 to vector<2x32xf32>
    %21 = arith.addf %20, %19 : vector<2x32xf32>
    %22 = arith.divf %20, %21 : vector<2x32xf32>
    %23 = vector.extract_strided_slice %16 {offsets = [0, 32], sizes = [2, 32], strides = [1, 1]} : vector<2x128xf32> to vector<2x32xf32>
    %24 = arith.negf %23 : vector<2x32xf32>
    %25 = math.exp %24 : vector<2x32xf32>
    %cst_19 = arith.constant 1.000000e+00 : f32
    %26 = vector.broadcast %cst_19 : f32 to vector<2x32xf32>
    %27 = arith.addf %26, %25 : vector<2x32xf32>
    %28 = arith.divf %26, %27 : vector<2x32xf32>
    %29 = vector.extract_strided_slice %16 {offsets = [0, 64], sizes = [2, 32], strides = [1, 1]} : vector<2x128xf32> to vector<2x32xf32>
    %30 = math.tanh %29 : vector<2x32xf32>
    %31 = vector.extract_strided_slice %16 {offsets = [0, 96], sizes = [2, 32], strides = [1, 1]} : vector<2x128xf32> to vector<2x32xf32>
    %32 = arith.negf %31 : vector<2x32xf32>
    %33 = math.exp %32 : vector<2x32xf32>
    %cst_20 = arith.constant 1.000000e+00 : f32
    %34 = vector.broadcast %cst_20 : f32 to vector<2x32xf32>
    %35 = arith.addf %34, %33 : vector<2x32xf32>
    %36 = arith.divf %34, %35 : vector<2x32xf32>
    %37 = arith.mulf %28, %9 : vector<2x32xf32>
    %38 = arith.mulf %22, %30 : vector<2x32xf32>
    %39 = arith.addf %37, %38 : vector<2x32xf32>
    %40 = math.tanh %39 : vector<2x32xf32>
    %41 = arith.mulf %36, %40 : vector<2x32xf32>
    %c0_21 = arith.constant 0 : index
    %c0_22 = arith.constant 0 : index
    %42 = vector.load %arg9[%c0_21, %c0_22] : memref<2x64xf32, #tpu.memory_space<vmem>>, vector<2x32xf32>
    tpu.vector_store %arg9[%c0_21, %c0_22], %41 {strides = array<i32>} : memref<2x64xf32, #tpu.memory_space<vmem>>, vector<2x32xf32>,
    %c0_23 = arith.constant 0 : index
    %c32 = arith.constant 32 : index
    %43 = vector.load %arg9[%c0_23, %c32] : memref<2x64xf32, #tpu.memory_space<vmem>>, vector<2x32xf32>
    tpu.vector_store %arg9[%c0_23, %c32], %9 {strides = array<i32>} : memref<2x64xf32, #tpu.memory_space<vmem>>, vector<2x32xf32>,
    %c0_24 = arith.constant 0 : index
    %c0_25 = arith.constant 0 : index
    %44 = vector.load %arg9[%c0_24, %c0_25] : memref<2x64xf32, #tpu.memory_space<vmem>>, vector<2x64xf32>
    %cst_26 = arith.constant dense<0.000000e+00> : vector<2x128xf32>
    %45 = tpu.matmul %44, %1, %cst_26 {dimension_numbers = #tpu.dot_dimension_numbers<[1], [0], [0], [1], [0, 0, 1, 1], [], []>} : vector<2x64xf32>, vector<64x128xf32>, vector<2x128xf32> -> vector<2x128xf32>
    %46 = arith.addf %45, %8 : vector<2x128xf32>
    %47 = vector.extract_strided_slice %46 {offsets = [0, 0], sizes = [2, 32], strides = [1, 1]} : vector<2x128xf32> to vector<2x32xf32>
    %48 = arith.negf %47 : vector<2x32xf32>
    %49 = math.exp %48 : vector<2x32xf32>
    %cst_27 = arith.constant 1.000000e+00 : f32
    %50 = vector.broadcast %cst_27 : f32 to vector<2x32xf32>
    %51 = arith.addf %50, %49 : vector<2x32xf32>
    %52 = arith.divf %50, %51 : vector<2x32xf32>
    %53 = vector.extract_strided_slice %46 {offsets = [0, 32], sizes = [2, 32], strides = [1, 1]} : vector<2x128xf32> to vector<2x32xf32>
    %54 = arith.negf %53 : vector<2x32xf32>
    %55 = math.exp %54 : vector<2x32xf32>
    %cst_28 = arith.constant 1.000000e+00 : f32
    %56 = vector.broadcast %cst_28 : f32 to vector<2x32xf32>
    %57 = arith.addf %56, %55 : vector<2x32xf32>
    %58 = arith.divf %56, %57 : vector<2x32xf32>
    %59 = vector.extract_strided_slice %46 {offsets = [0, 64], sizes = [2, 32], strides = [1, 1]} : vector<2x128xf32> to vector<2x32xf32>
    %60 = math.tanh %59 : vector<2x32xf32>
    %61 = vector.extract_strided_slice %46 {offsets = [0, 96], sizes = [2, 32], strides = [1, 1]} : vector<2x128xf32> to vector<2x32xf32>
    %62 = arith.negf %61 : vector<2x32xf32>
    %63 = math.exp %62 : vector<2x32xf32>
    %cst_29 = arith.constant 1.000000e+00 : f32
    %64 = vector.broadcast %cst_29 : f32 to vector<2x32xf32>
    %65 = arith.addf %64, %63 : vector<2x32xf32>
    %66 = arith.divf %64, %65 : vector<2x32xf32>
    %67 = arith.mulf %58, %9 : vector<2x32xf32>
    %68 = arith.mulf %52, %60 : vector<2x32xf32>
    %69 = arith.addf %67, %68 : vector<2x32xf32>
    %70 = math.tanh %69 : vector<2x32xf32>
    %71 = arith.mulf %66, %70 : vector<2x32xf32>
    %c0_30 = arith.constant 0 : index
    %c1 = arith.constant 1 : index
    %c0_31 = arith.constant 0 : index
    %72 = vector.load %arg0[%c0_30, %c1, %c0_31] : memref<2x8x4xf32, #tpu.memory_space<vmem>>, vector<2x1x4xf32>
    %73 = vector.shape_cast %72 : vector<2x1x4xf32> to vector<2x4xf32>
    %c0_32 = arith.constant 0 : index
    %c0_33 = arith.constant 0 : index
    %74 = vector.load %arg8[%c0_32, %c0_33] : memref<2x36xf32, #tpu.memory_space<vmem>>, vector<2x4xf32>
    tpu.vector_store %arg8[%c0_32, %c0_33], %73 {strides = array<i32>} : memref<2x36xf32, #tpu.memory_space<vmem>>, vector<2x4xf32>,
    %c0_34 = arith.constant 0 : index
    %c4_35 = arith.constant 4 : index
    %75 = vector.load %arg8[%c0_34, %c4_35] : memref<2x36xf32, #tpu.memory_space<vmem>>, vector<2x32xf32>
    tpu.vector_store %arg8[%c0_34, %c4_35], %41 {strides = array<i32>} : memref<2x36xf32, #tpu.memory_space<vmem>>, vector<2x32xf32>,
    %c0_36 = arith.constant 0 : index
    %c0_37 = arith.constant 0 : index
    %76 = vector.load %arg8[%c0_36, %c0_37] : memref<2x36xf32, #tpu.memory_space<vmem>>, vector<2x36xf32>
    %cst_38 = arith.constant dense<0.000000e+00> : vector<2x128xf32>
    %77 = tpu.matmul %76, %0, %cst_38 {dimension_numbers = #tpu.dot_dimension_numbers<[1], [0], [0], [1], [0, 0, 1, 1], [], []>} : vector<2x36xf32>, vector<36x128xf32>, vector<2x128xf32> -> vector<2x128xf32>
    %78 = arith.addf %77, %5 : vector<2x128xf32>
    %79 = vector.extract_strided_slice %78 {offsets = [0, 0], sizes = [2, 32], strides = [1, 1]} : vector<2x128xf32> to vector<2x32xf32>
    %80 = arith.negf %79 : vector<2x32xf32>
    %81 = math.exp %80 : vector<2x32xf32>
    %cst_39 = arith.constant 1.000000e+00 : f32
    %82 = vector.broadcast %cst_39 : f32 to vector<2x32xf32>
    %83 = arith.addf %82, %81 : vector<2x32xf32>
    %84 = arith.divf %82, %83 : vector<2x32xf32>
    %85 = vector.extract_strided_slice %78 {offsets = [0, 32], sizes = [2, 32], strides = [1, 1]} : vector<2x128xf32> to vector<2x32xf32>
    %86 = arith.negf %85 : vector<2x32xf32>
    %87 = math.exp %86 : vector<2x32xf32>
    %cst_40 = arith.constant 1.000000e+00 : f32
    %88 = vector.broadcast %cst_40 : f32 to vector<2x32xf32>
    %89 = arith.addf %88, %87 : vector<2x32xf32>
    %90 = arith.divf %88, %89 : vector<2x32xf32>
    %91 = vector.extract_strided_slice %78 {offsets = [0, 64], sizes = [2, 32], strides = [1, 1]} : vector<2x128xf32> to vector<2x32xf32>
    %92 = math.tanh %91 : vector<2x32xf32>
    %93 = vector.extract_strided_slice %78 {offsets = [0, 96], sizes = [2, 32], strides = [1, 1]} : vector<2x128xf32> to vector<2x32xf32>
    %94 = arith.negf %93 : vector<2x32xf32>
    %95 = math.exp %94 : vector<2x32xf32>
    %cst_41 = arith.constant 1.000000e+00 : f32
    %96 = vector.broadcast %cst_41 : f32 to vector<2x32xf32>
    %97 = arith.addf %96, %95 : vector<2x32xf32>
    %98 = arith.divf %96, %97 : vector<2x32xf32>
    %99 = arith.mulf %90, %39 : vector<2x32xf32>
    %100 = arith.mulf %84, %92 : vector<2x32xf32>
    %101 = arith.addf %99, %100 : vector<2x32xf32>
    %102 = math.tanh %101 : vector<2x32xf32>
    %103 = arith.mulf %98, %102 : vector<2x32xf32>
    %c0_42 = arith.constant 0 : index
    %c0_43 = arith.constant 0 : index
    %104 = vector.load %arg9[%c0_42, %c0_43] : memref<2x64xf32, #tpu.memory_space<vmem>>, vector<2x32xf32>
    tpu.vector_store %arg9[%c0_42, %c0_43], %103 {strides = array<i32>} : memref<2x64xf32, #tpu.memory_space<vmem>>, vector<2x32xf32>,
    %c0_44 = arith.constant 0 : index
    %c32_45 = arith.constant 32 : index
    %105 = vector.load %arg9[%c0_44, %c32_45] : memref<2x64xf32, #tpu.memory_space<vmem>>, vector<2x32xf32>
    tpu.vector_store %arg9[%c0_44, %c32_45], %71 {strides = array<i32>} : memref<2x64xf32, #tpu.memory_space<vmem>>, vector<2x32xf32>,
    %c0_46 = arith.constant 0 : index
    %c0_47 = arith.constant 0 : index
    %106 = vector.load %arg9[%c0_46, %c0_47] : memref<2x64xf32, #tpu.memory_space<vmem>>, vector<2x64xf32>
    %cst_48 = arith.constant dense<0.000000e+00> : vector<2x128xf32>
    %107 = tpu.matmul %106, %1, %cst_48 {dimension_numbers = #tpu.dot_dimension_numbers<[1], [0], [0], [1], [0, 0, 1, 1], [], []>} : vector<2x64xf32>, vector<64x128xf32>, vector<2x128xf32> -> vector<2x128xf32>
    %108 = arith.addf %107, %8 : vector<2x128xf32>
    %109 = vector.extract_strided_slice %108 {offsets = [0, 0], sizes = [2, 32], strides = [1, 1]} : vector<2x128xf32> to vector<2x32xf32>
    %110 = arith.negf %109 : vector<2x32xf32>
    %111 = math.exp %110 : vector<2x32xf32>
    %cst_49 = arith.constant 1.000000e+00 : f32
    %112 = vector.broadcast %cst_49 : f32 to vector<2x32xf32>
    %113 = arith.addf %112, %111 : vector<2x32xf32>
    %114 = arith.divf %112, %113 : vector<2x32xf32>
    %115 = vector.extract_strided_slice %108 {offsets = [0, 32], sizes = [2, 32], strides = [1, 1]} : vector<2x128xf32> to vector<2x32xf32>
    %116 = arith.negf %115 : vector<2x32xf32>
    %117 = math.exp %116 : vector<2x32xf32>
    %cst_50 = arith.constant 1.000000e+00 : f32
    %118 = vector.broadcast %cst_50 : f32 to vector<2x32xf32>
    %119 = arith.addf %118, %117 : vector<2x32xf32>
    %120 = arith.divf %118, %119 : vector<2x32xf32>
    %121 = vector.extract_strided_slice %108 {offsets = [0, 64], sizes = [2, 32], strides = [1, 1]} : vector<2x128xf32> to vector<2x32xf32>
    %122 = math.tanh %121 : vector<2x32xf32>
    %123 = vector.extract_strided_slice %108 {offsets = [0, 96], sizes = [2, 32], strides = [1, 1]} : vector<2x128xf32> to vector<2x32xf32>
    %124 = arith.negf %123 : vector<2x32xf32>
    %125 = math.exp %124 : vector<2x32xf32>
    %cst_51 = arith.constant 1.000000e+00 : f32
    %126 = vector.broadcast %cst_51 : f32 to vector<2x32xf32>
    %127 = arith.addf %126, %125 : vector<2x32xf32>
    %128 = arith.divf %126, %127 : vector<2x32xf32>
    %129 = arith.mulf %120, %69 : vector<2x32xf32>
    %130 = arith.mulf %114, %122 : vector<2x32xf32>
    %131 = arith.addf %129, %130 : vector<2x32xf32>
    %132 = math.tanh %131 : vector<2x32xf32>
    %133 = arith.mulf %128, %132 : vector<2x32xf32>
    %c0_52 = arith.constant 0 : index
    %c2 = arith.constant 2 : index
    %c0_53 = arith.constant 0 : index
    %134 = vector.load %arg0[%c0_52, %c2, %c0_53] : memref<2x8x4xf32, #tpu.memory_space<vmem>>, vector<2x1x4xf32>
    %135 = vector.shape_cast %134 : vector<2x1x4xf32> to vector<2x4xf32>
    %c0_54 = arith.constant 0 : index
    %c0_55 = arith.constant 0 : index
    %136 = vector.load %arg8[%c0_54, %c0_55] : memref<2x36xf32, #tpu.memory_space<vmem>>, vector<2x4xf32>
    tpu.vector_store %arg8[%c0_54, %c0_55], %135 {strides = array<i32>} : memref<2x36xf32, #tpu.memory_space<vmem>>, vector<2x4xf32>,
    %c0_56 = arith.constant 0 : index
    %c4_57 = arith.constant 4 : index
    %137 = vector.load %arg8[%c0_56, %c4_57] : memref<2x36xf32, #tpu.memory_space<vmem>>, vector<2x32xf32>
    tpu.vector_store %arg8[%c0_56, %c4_57], %103 {strides = array<i32>} : memref<2x36xf32, #tpu.memory_space<vmem>>, vector<2x32xf32>,
    %c0_58 = arith.constant 0 : index
    %c0_59 = arith.constant 0 : index
    %138 = vector.load %arg8[%c0_58, %c0_59] : memref<2x36xf32, #tpu.memory_space<vmem>>, vector<2x36xf32>
    %cst_60 = arith.constant dense<0.000000e+00> : vector<2x128xf32>
    %139 = tpu.matmul %138, %0, %cst_60 {dimension_numbers = #tpu.dot_dimension_numbers<[1], [0], [0], [1], [0, 0, 1, 1], [], []>} : vector<2x36xf32>, vector<36x128xf32>, vector<2x128xf32> -> vector<2x128xf32>
    %140 = arith.addf %139, %5 : vector<2x128xf32>
    %141 = vector.extract_strided_slice %140 {offsets = [0, 0], sizes = [2, 32], strides = [1, 1]} : vector<2x128xf32> to vector<2x32xf32>
    %142 = arith.negf %141 : vector<2x32xf32>
    %143 = math.exp %142 : vector<2x32xf32>
    %cst_61 = arith.constant 1.000000e+00 : f32
    %144 = vector.broadcast %cst_61 : f32 to vector<2x32xf32>
    %145 = arith.addf %144, %143 : vector<2x32xf32>
    %146 = arith.divf %144, %145 : vector<2x32xf32>
    %147 = vector.extract_strided_slice %140 {offsets = [0, 32], sizes = [2, 32], strides = [1, 1]} : vector<2x128xf32> to vector<2x32xf32>
    %148 = arith.negf %147 : vector<2x32xf32>
    %149 = math.exp %148 : vector<2x32xf32>
    %cst_62 = arith.constant 1.000000e+00 : f32
    %150 = vector.broadcast %cst_62 : f32 to vector<2x32xf32>
    %151 = arith.addf %150, %149 : vector<2x32xf32>
    %152 = arith.divf %150, %151 : vector<2x32xf32>
    %153 = vector.extract_strided_slice %140 {offsets = [0, 64], sizes = [2, 32], strides = [1, 1]} : vector<2x128xf32> to vector<2x32xf32>
    %154 = math.tanh %153 : vector<2x32xf32>
    %155 = vector.extract_strided_slice %140 {offsets = [0, 96], sizes = [2, 32], strides = [1, 1]} : vector<2x128xf32> to vector<2x32xf32>
    %156 = arith.negf %155 : vector<2x32xf32>
    %157 = math.exp %156 : vector<2x32xf32>
    %cst_63 = arith.constant 1.000000e+00 : f32
    %158 = vector.broadcast %cst_63 : f32 to vector<2x32xf32>
    %159 = arith.addf %158, %157 : vector<2x32xf32>
    %160 = arith.divf %158, %159 : vector<2x32xf32>
    %161 = arith.mulf %152, %101 : vector<2x32xf32>
    %162 = arith.mulf %146, %154 : vector<2x32xf32>
    %163 = arith.addf %161, %162 : vector<2x32xf32>
    %164 = math.tanh %163 : vector<2x32xf32>
    %165 = arith.mulf %160, %164 : vector<2x32xf32>
    %c0_64 = arith.constant 0 : index
    %c0_65 = arith.constant 0 : index
    %166 = vector.load %arg9[%c0_64, %c0_65] : memref<2x64xf32, #tpu.memory_space<vmem>>, vector<2x32xf32>
    tpu.vector_store %arg9[%c0_64, %c0_65], %165 {strides = array<i32>} : memref<2x64xf32, #tpu.memory_space<vmem>>, vector<2x32xf32>,
    %c0_66 = arith.constant 0 : index
    %c32_67 = arith.constant 32 : index
    %167 = vector.load %arg9[%c0_66, %c32_67] : memref<2x64xf32, #tpu.memory_space<vmem>>, vector<2x32xf32>
    tpu.vector_store %arg9[%c0_66, %c32_67], %133 {strides = array<i32>} : memref<2x64xf32, #tpu.memory_space<vmem>>, vector<2x32xf32>,
    %c0_68 = arith.constant 0 : index
    %c0_69 = arith.constant 0 : index
    %168 = vector.load %arg9[%c0_68, %c0_69] : memref<2x64xf32, #tpu.memory_space<vmem>>, vector<2x64xf32>
    %cst_70 = arith.constant dense<0.000000e+00> : vector<2x128xf32>
    %169 = tpu.matmul %168, %1, %cst_70 {dimension_numbers = #tpu.dot_dimension_numbers<[1], [0], [0], [1], [0, 0, 1, 1], [], []>} : vector<2x64xf32>, vector<64x128xf32>, vector<2x128xf32> -> vector<2x128xf32>
    %170 = arith.addf %169, %8 : vector<2x128xf32>
    %171 = vector.extract_strided_slice %170 {offsets = [0, 0], sizes = [2, 32], strides = [1, 1]} : vector<2x128xf32> to vector<2x32xf32>
    %172 = arith.negf %171 : vector<2x32xf32>
    %173 = math.exp %172 : vector<2x32xf32>
    %cst_71 = arith.constant 1.000000e+00 : f32
    %174 = vector.broadcast %cst_71 : f32 to vector<2x32xf32>
    %175 = arith.addf %174, %173 : vector<2x32xf32>
    %176 = arith.divf %174, %175 : vector<2x32xf32>
    %177 = vector.extract_strided_slice %170 {offsets = [0, 32], sizes = [2, 32], strides = [1, 1]} : vector<2x128xf32> to vector<2x32xf32>
    %178 = arith.negf %177 : vector<2x32xf32>
    %179 = math.exp %178 : vector<2x32xf32>
    %cst_72 = arith.constant 1.000000e+00 : f32
    %180 = vector.broadcast %cst_72 : f32 to vector<2x32xf32>
    %181 = arith.addf %180, %179 : vector<2x32xf32>
    %182 = arith.divf %180, %181 : vector<2x32xf32>
    %183 = vector.extract_strided_slice %170 {offsets = [0, 64], sizes = [2, 32], strides = [1, 1]} : vector<2x128xf32> to vector<2x32xf32>
    %184 = math.tanh %183 : vector<2x32xf32>
    %185 = vector.extract_strided_slice %170 {offsets = [0, 96], sizes = [2, 32], strides = [1, 1]} : vector<2x128xf32> to vector<2x32xf32>
    %186 = arith.negf %185 : vector<2x32xf32>
    %187 = math.exp %186 : vector<2x32xf32>
    %cst_73 = arith.constant 1.000000e+00 : f32
    %188 = vector.broadcast %cst_73 : f32 to vector<2x32xf32>
    %189 = arith.addf %188, %187 : vector<2x32xf32>
    %190 = arith.divf %188, %189 : vector<2x32xf32>
    %191 = arith.mulf %182, %131 : vector<2x32xf32>
    %192 = arith.mulf %176, %184 : vector<2x32xf32>
    %193 = arith.addf %191, %192 : vector<2x32xf32>
    %194 = math.tanh %193 : vector<2x32xf32>
    %195 = arith.mulf %190, %194 : vector<2x32xf32>
    %c0_74 = arith.constant 0 : index
    %c3 = arith.constant 3 : index
    %c0_75 = arith.constant 0 : index
    %196 = vector.load %arg0[%c0_74, %c3, %c0_75] : memref<2x8x4xf32, #tpu.memory_space<vmem>>, vector<2x1x4xf32>
    %197 = vector.shape_cast %196 : vector<2x1x4xf32> to vector<2x4xf32>
    %c0_76 = arith.constant 0 : index
    %c0_77 = arith.constant 0 : index
    %198 = vector.load %arg8[%c0_76, %c0_77] : memref<2x36xf32, #tpu.memory_space<vmem>>, vector<2x4xf32>
    tpu.vector_store %arg8[%c0_76, %c0_77], %197 {strides = array<i32>} : memref<2x36xf32, #tpu.memory_space<vmem>>, vector<2x4xf32>,
    %c0_78 = arith.constant 0 : index
    %c4_79 = arith.constant 4 : index
    %199 = vector.load %arg8[%c0_78, %c4_79] : memref<2x36xf32, #tpu.memory_space<vmem>>, vector<2x32xf32>
    tpu.vector_store %arg8[%c0_78, %c4_79], %165 {strides = array<i32>} : memref<2x36xf32, #tpu.memory_space<vmem>>, vector<2x32xf32>,
    %c0_80 = arith.constant 0 : index
    %c0_81 = arith.constant 0 : index
    %200 = vector.load %arg8[%c0_80, %c0_81] : memref<2x36xf32, #tpu.memory_space<vmem>>, vector<2x36xf32>
    %cst_82 = arith.constant dense<0.000000e+00> : vector<2x128xf32>
    %201 = tpu.matmul %200, %0, %cst_82 {dimension_numbers = #tpu.dot_dimension_numbers<[1], [0], [0], [1], [0, 0, 1, 1], [], []>} : vector<2x36xf32>, vector<36x128xf32>, vector<2x128xf32> -> vector<2x128xf32>
    %202 = arith.addf %201, %5 : vector<2x128xf32>
    %203 = vector.extract_strided_slice %202 {offsets = [0, 0], sizes = [2, 32], strides = [1, 1]} : vector<2x128xf32> to vector<2x32xf32>
    %204 = arith.negf %203 : vector<2x32xf32>
    %205 = math.exp %204 : vector<2x32xf32>
    %cst_83 = arith.constant 1.000000e+00 : f32
    %206 = vector.broadcast %cst_83 : f32 to vector<2x32xf32>
    %207 = arith.addf %206, %205 : vector<2x32xf32>
    %208 = arith.divf %206, %207 : vector<2x32xf32>
    %209 = vector.extract_strided_slice %202 {offsets = [0, 32], sizes = [2, 32], strides = [1, 1]} : vector<2x128xf32> to vector<2x32xf32>
    %210 = arith.negf %209 : vector<2x32xf32>
    %211 = math.exp %210 : vector<2x32xf32>
    %cst_84 = arith.constant 1.000000e+00 : f32
    %212 = vector.broadcast %cst_84 : f32 to vector<2x32xf32>
    %213 = arith.addf %212, %211 : vector<2x32xf32>
    %214 = arith.divf %212, %213 : vector<2x32xf32>
    %215 = vector.extract_strided_slice %202 {offsets = [0, 64], sizes = [2, 32], strides = [1, 1]} : vector<2x128xf32> to vector<2x32xf32>
    %216 = math.tanh %215 : vector<2x32xf32>
    %217 = vector.extract_strided_slice %202 {offsets = [0, 96], sizes = [2, 32], strides = [1, 1]} : vector<2x128xf32> to vector<2x32xf32>
    %218 = arith.negf %217 : vector<2x32xf32>
    %219 = math.exp %218 : vector<2x32xf32>
    %cst_85 = arith.constant 1.000000e+00 : f32
    %220 = vector.broadcast %cst_85 : f32 to vector<2x32xf32>
    %221 = arith.addf %220, %219 : vector<2x32xf32>
    %222 = arith.divf %220, %221 : vector<2x32xf32>
    %223 = arith.mulf %214, %163 : vector<2x32xf32>
    %224 = arith.mulf %208, %216 : vector<2x32xf32>
    %225 = arith.addf %223, %224 : vector<2x32xf32>
    %226 = math.tanh %225 : vector<2x32xf32>
    %227 = arith.mulf %222, %226 : vector<2x32xf32>
    %c0_86 = arith.constant 0 : index
    %c0_87 = arith.constant 0 : index
    %228 = vector.load %arg9[%c0_86, %c0_87] : memref<2x64xf32, #tpu.memory_space<vmem>>, vector<2x32xf32>
    tpu.vector_store %arg9[%c0_86, %c0_87], %227 {strides = array<i32>} : memref<2x64xf32, #tpu.memory_space<vmem>>, vector<2x32xf32>,
    %c0_88 = arith.constant 0 : index
    %c32_89 = arith.constant 32 : index
    %229 = vector.load %arg9[%c0_88, %c32_89] : memref<2x64xf32, #tpu.memory_space<vmem>>, vector<2x32xf32>
    tpu.vector_store %arg9[%c0_88, %c32_89], %195 {strides = array<i32>} : memref<2x64xf32, #tpu.memory_space<vmem>>, vector<2x32xf32>,
    %c0_90 = arith.constant 0 : index
    %c0_91 = arith.constant 0 : index
    %230 = vector.load %arg9[%c0_90, %c0_91] : memref<2x64xf32, #tpu.memory_space<vmem>>, vector<2x64xf32>
    %cst_92 = arith.constant dense<0.000000e+00> : vector<2x128xf32>
    %231 = tpu.matmul %230, %1, %cst_92 {dimension_numbers = #tpu.dot_dimension_numbers<[1], [0], [0], [1], [0, 0, 1, 1], [], []>} : vector<2x64xf32>, vector<64x128xf32>, vector<2x128xf32> -> vector<2x128xf32>
    %232 = arith.addf %231, %8 : vector<2x128xf32>
    %233 = vector.extract_strided_slice %232 {offsets = [0, 0], sizes = [2, 32], strides = [1, 1]} : vector<2x128xf32> to vector<2x32xf32>
    %234 = arith.negf %233 : vector<2x32xf32>
    %235 = math.exp %234 : vector<2x32xf32>
    %cst_93 = arith.constant 1.000000e+00 : f32
    %236 = vector.broadcast %cst_93 : f32 to vector<2x32xf32>
    %237 = arith.addf %236, %235 : vector<2x32xf32>
    %238 = arith.divf %236, %237 : vector<2x32xf32>
    %239 = vector.extract_strided_slice %232 {offsets = [0, 32], sizes = [2, 32], strides = [1, 1]} : vector<2x128xf32> to vector<2x32xf32>
    %240 = arith.negf %239 : vector<2x32xf32>
    %241 = math.exp %240 : vector<2x32xf32>
    %cst_94 = arith.constant 1.000000e+00 : f32
    %242 = vector.broadcast %cst_94 : f32 to vector<2x32xf32>
    %243 = arith.addf %242, %241 : vector<2x32xf32>
    %244 = arith.divf %242, %243 : vector<2x32xf32>
    %245 = vector.extract_strided_slice %232 {offsets = [0, 64], sizes = [2, 32], strides = [1, 1]} : vector<2x128xf32> to vector<2x32xf32>
    %246 = math.tanh %245 : vector<2x32xf32>
    %247 = vector.extract_strided_slice %232 {offsets = [0, 96], sizes = [2, 32], strides = [1, 1]} : vector<2x128xf32> to vector<2x32xf32>
    %248 = arith.negf %247 : vector<2x32xf32>
    %249 = math.exp %248 : vector<2x32xf32>
    %cst_95 = arith.constant 1.000000e+00 : f32
    %250 = vector.broadcast %cst_95 : f32 to vector<2x32xf32>
    %251 = arith.addf %250, %249 : vector<2x32xf32>
    %252 = arith.divf %250, %251 : vector<2x32xf32>
    %253 = arith.mulf %244, %193 : vector<2x32xf32>
    %254 = arith.mulf %238, %246 : vector<2x32xf32>
    %255 = arith.addf %253, %254 : vector<2x32xf32>
    %256 = math.tanh %255 : vector<2x32xf32>
    %257 = arith.mulf %252, %256 : vector<2x32xf32>
    %c0_96 = arith.constant 0 : index
    %c4_97 = arith.constant 4 : index
    %c0_98 = arith.constant 0 : index
    %258 = vector.load %arg0[%c0_96, %c4_97, %c0_98] : memref<2x8x4xf32, #tpu.memory_space<vmem>>, vector<2x1x4xf32>
    %259 = vector.shape_cast %258 : vector<2x1x4xf32> to vector<2x4xf32>
    %c0_99 = arith.constant 0 : index
    %c0_100 = arith.constant 0 : index
    %260 = vector.load %arg8[%c0_99, %c0_100] : memref<2x36xf32, #tpu.memory_space<vmem>>, vector<2x4xf32>
    tpu.vector_store %arg8[%c0_99, %c0_100], %259 {strides = array<i32>} : memref<2x36xf32, #tpu.memory_space<vmem>>, vector<2x4xf32>,
    %c0_101 = arith.constant 0 : index
    %c4_102 = arith.constant 4 : index
    %261 = vector.load %arg8[%c0_101, %c4_102] : memref<2x36xf32, #tpu.memory_space<vmem>>, vector<2x32xf32>
    tpu.vector_store %arg8[%c0_101, %c4_102], %227 {strides = array<i32>} : memref<2x36xf32, #tpu.memory_space<vmem>>, vector<2x32xf32>,
    %c0_103 = arith.constant 0 : index
    %c0_104 = arith.constant 0 : index
    %262 = vector.load %arg8[%c0_103, %c0_104] : memref<2x36xf32, #tpu.memory_space<vmem>>, vector<2x36xf32>
    %cst_105 = arith.constant dense<0.000000e+00> : vector<2x128xf32>
    %263 = tpu.matmul %262, %0, %cst_105 {dimension_numbers = #tpu.dot_dimension_numbers<[1], [0], [0], [1], [0, 0, 1, 1], [], []>} : vector<2x36xf32>, vector<36x128xf32>, vector<2x128xf32> -> vector<2x128xf32>
    %264 = arith.addf %263, %5 : vector<2x128xf32>
    %265 = vector.extract_strided_slice %264 {offsets = [0, 0], sizes = [2, 32], strides = [1, 1]} : vector<2x128xf32> to vector<2x32xf32>
    %266 = arith.negf %265 : vector<2x32xf32>
    %267 = math.exp %266 : vector<2x32xf32>
    %cst_106 = arith.constant 1.000000e+00 : f32
    %268 = vector.broadcast %cst_106 : f32 to vector<2x32xf32>
    %269 = arith.addf %268, %267 : vector<2x32xf32>
    %270 = arith.divf %268, %269 : vector<2x32xf32>
    %271 = vector.extract_strided_slice %264 {offsets = [0, 32], sizes = [2, 32], strides = [1, 1]} : vector<2x128xf32> to vector<2x32xf32>
    %272 = arith.negf %271 : vector<2x32xf32>
    %273 = math.exp %272 : vector<2x32xf32>
    %cst_107 = arith.constant 1.000000e+00 : f32
    %274 = vector.broadcast %cst_107 : f32 to vector<2x32xf32>
    %275 = arith.addf %274, %273 : vector<2x32xf32>
    %276 = arith.divf %274, %275 : vector<2x32xf32>
    %277 = vector.extract_strided_slice %264 {offsets = [0, 64], sizes = [2, 32], strides = [1, 1]} : vector<2x128xf32> to vector<2x32xf32>
    %278 = math.tanh %277 : vector<2x32xf32>
    %279 = vector.extract_strided_slice %264 {offsets = [0, 96], sizes = [2, 32], strides = [1, 1]} : vector<2x128xf32> to vector<2x32xf32>
    %280 = arith.negf %279 : vector<2x32xf32>
    %281 = math.exp %280 : vector<2x32xf32>
    %cst_108 = arith.constant 1.000000e+00 : f32
    %282 = vector.broadcast %cst_108 : f32 to vector<2x32xf32>
    %283 = arith.addf %282, %281 : vector<2x32xf32>
    %284 = arith.divf %282, %283 : vector<2x32xf32>
    %285 = arith.mulf %276, %225 : vector<2x32xf32>
    %286 = arith.mulf %270, %278 : vector<2x32xf32>
    %287 = arith.addf %285, %286 : vector<2x32xf32>
    %288 = math.tanh %287 : vector<2x32xf32>
    %289 = arith.mulf %284, %288 : vector<2x32xf32>
    %c0_109 = arith.constant 0 : index
    %c0_110 = arith.constant 0 : index
    %290 = vector.load %arg9[%c0_109, %c0_110] : memref<2x64xf32, #tpu.memory_space<vmem>>, vector<2x32xf32>
    tpu.vector_store %arg9[%c0_109, %c0_110], %289 {strides = array<i32>} : memref<2x64xf32, #tpu.memory_space<vmem>>, vector<2x32xf32>,
    %c0_111 = arith.constant 0 : index
    %c32_112 = arith.constant 32 : index
    %291 = vector.load %arg9[%c0_111, %c32_112] : memref<2x64xf32, #tpu.memory_space<vmem>>, vector<2x32xf32>
    tpu.vector_store %arg9[%c0_111, %c32_112], %257 {strides = array<i32>} : memref<2x64xf32, #tpu.memory_space<vmem>>, vector<2x32xf32>,
    %c0_113 = arith.constant 0 : index
    %c0_114 = arith.constant 0 : index
    %292 = vector.load %arg9[%c0_113, %c0_114] : memref<2x64xf32, #tpu.memory_space<vmem>>, vector<2x64xf32>
    %cst_115 = arith.constant dense<0.000000e+00> : vector<2x128xf32>
    %293 = tpu.matmul %292, %1, %cst_115 {dimension_numbers = #tpu.dot_dimension_numbers<[1], [0], [0], [1], [0, 0, 1, 1], [], []>} : vector<2x64xf32>, vector<64x128xf32>, vector<2x128xf32> -> vector<2x128xf32>
    %294 = arith.addf %293, %8 : vector<2x128xf32>
    %295 = vector.extract_strided_slice %294 {offsets = [0, 0], sizes = [2, 32], strides = [1, 1]} : vector<2x128xf32> to vector<2x32xf32>
    %296 = arith.negf %295 : vector<2x32xf32>
    %297 = math.exp %296 : vector<2x32xf32>
    %cst_116 = arith.constant 1.000000e+00 : f32
    %298 = vector.broadcast %cst_116 : f32 to vector<2x32xf32>
    %299 = arith.addf %298, %297 : vector<2x32xf32>
    %300 = arith.divf %298, %299 : vector<2x32xf32>
    %301 = vector.extract_strided_slice %294 {offsets = [0, 32], sizes = [2, 32], strides = [1, 1]} : vector<2x128xf32> to vector<2x32xf32>
    %302 = arith.negf %301 : vector<2x32xf32>
    %303 = math.exp %302 : vector<2x32xf32>
    %cst_117 = arith.constant 1.000000e+00 : f32
    %304 = vector.broadcast %cst_117 : f32 to vector<2x32xf32>
    %305 = arith.addf %304, %303 : vector<2x32xf32>
    %306 = arith.divf %304, %305 : vector<2x32xf32>
    %307 = vector.extract_strided_slice %294 {offsets = [0, 64], sizes = [2, 32], strides = [1, 1]} : vector<2x128xf32> to vector<2x32xf32>
    %308 = math.tanh %307 : vector<2x32xf32>
    %309 = vector.extract_strided_slice %294 {offsets = [0, 96], sizes = [2, 32], strides = [1, 1]} : vector<2x128xf32> to vector<2x32xf32>
    %310 = arith.negf %309 : vector<2x32xf32>
    %311 = math.exp %310 : vector<2x32xf32>
    %cst_118 = arith.constant 1.000000e+00 : f32
    %312 = vector.broadcast %cst_118 : f32 to vector<2x32xf32>
    %313 = arith.addf %312, %311 : vector<2x32xf32>
    %314 = arith.divf %312, %313 : vector<2x32xf32>
    %315 = arith.mulf %306, %255 : vector<2x32xf32>
    %316 = arith.mulf %300, %308 : vector<2x32xf32>
    %317 = arith.addf %315, %316 : vector<2x32xf32>
    %318 = math.tanh %317 : vector<2x32xf32>
    %319 = arith.mulf %314, %318 : vector<2x32xf32>
    %c0_119 = arith.constant 0 : index
    %c5 = arith.constant 5 : index
    %c0_120 = arith.constant 0 : index
    %320 = vector.load %arg0[%c0_119, %c5, %c0_120] : memref<2x8x4xf32, #tpu.memory_space<vmem>>, vector<2x1x4xf32>
    %321 = vector.shape_cast %320 : vector<2x1x4xf32> to vector<2x4xf32>
    %c0_121 = arith.constant 0 : index
    %c0_122 = arith.constant 0 : index
    %322 = vector.load %arg8[%c0_121, %c0_122] : memref<2x36xf32, #tpu.memory_space<vmem>>, vector<2x4xf32>
    tpu.vector_store %arg8[%c0_121, %c0_122], %321 {strides = array<i32>} : memref<2x36xf32, #tpu.memory_space<vmem>>, vector<2x4xf32>,
    %c0_123 = arith.constant 0 : index
    %c4_124 = arith.constant 4 : index
    %323 = vector.load %arg8[%c0_123, %c4_124] : memref<2x36xf32, #tpu.memory_space<vmem>>, vector<2x32xf32>
    tpu.vector_store %arg8[%c0_123, %c4_124], %289 {strides = array<i32>} : memref<2x36xf32, #tpu.memory_space<vmem>>, vector<2x32xf32>,
    %c0_125 = arith.constant 0 : index
    %c0_126 = arith.constant 0 : index
    %324 = vector.load %arg8[%c0_125, %c0_126] : memref<2x36xf32, #tpu.memory_space<vmem>>, vector<2x36xf32>
    %cst_127 = arith.constant dense<0.000000e+00> : vector<2x128xf32>
    %325 = tpu.matmul %324, %0, %cst_127 {dimension_numbers = #tpu.dot_dimension_numbers<[1], [0], [0], [1], [0, 0, 1, 1], [], []>} : vector<2x36xf32>, vector<36x128xf32>, vector<2x128xf32> -> vector<2x128xf32>
    %326 = arith.addf %325, %5 : vector<2x128xf32>
    %327 = vector.extract_strided_slice %326 {offsets = [0, 0], sizes = [2, 32], strides = [1, 1]} : vector<2x128xf32> to vector<2x32xf32>
    %328 = arith.negf %327 : vector<2x32xf32>
    %329 = math.exp %328 : vector<2x32xf32>
    %cst_128 = arith.constant 1.000000e+00 : f32
    %330 = vector.broadcast %cst_128 : f32 to vector<2x32xf32>
    %331 = arith.addf %330, %329 : vector<2x32xf32>
    %332 = arith.divf %330, %331 : vector<2x32xf32>
    %333 = vector.extract_strided_slice %326 {offsets = [0, 32], sizes = [2, 32], strides = [1, 1]} : vector<2x128xf32> to vector<2x32xf32>
    %334 = arith.negf %333 : vector<2x32xf32>
    %335 = math.exp %334 : vector<2x32xf32>
    %cst_129 = arith.constant 1.000000e+00 : f32
    %336 = vector.broadcast %cst_129 : f32 to vector<2x32xf32>
    %337 = arith.addf %336, %335 : vector<2x32xf32>
    %338 = arith.divf %336, %337 : vector<2x32xf32>
    %339 = vector.extract_strided_slice %326 {offsets = [0, 64], sizes = [2, 32], strides = [1, 1]} : vector<2x128xf32> to vector<2x32xf32>
    %340 = math.tanh %339 : vector<2x32xf32>
    %341 = vector.extract_strided_slice %326 {offsets = [0, 96], sizes = [2, 32], strides = [1, 1]} : vector<2x128xf32> to vector<2x32xf32>
    %342 = arith.negf %341 : vector<2x32xf32>
    %343 = math.exp %342 : vector<2x32xf32>
    %cst_130 = arith.constant 1.000000e+00 : f32
    %344 = vector.broadcast %cst_130 : f32 to vector<2x32xf32>
    %345 = arith.addf %344, %343 : vector<2x32xf32>
    %346 = arith.divf %344, %345 : vector<2x32xf32>
    %347 = arith.mulf %338, %287 : vector<2x32xf32>
    %348 = arith.mulf %332, %340 : vector<2x32xf32>
    %349 = arith.addf %347, %348 : vector<2x32xf32>
    %350 = math.tanh %349 : vector<2x32xf32>
    %351 = arith.mulf %346, %350 : vector<2x32xf32>
    %c0_131 = arith.constant 0 : index
    %c0_132 = arith.constant 0 : index
    %352 = vector.load %arg9[%c0_131, %c0_132] : memref<2x64xf32, #tpu.memory_space<vmem>>, vector<2x32xf32>
    tpu.vector_store %arg9[%c0_131, %c0_132], %351 {strides = array<i32>} : memref<2x64xf32, #tpu.memory_space<vmem>>, vector<2x32xf32>,
    %c0_133 = arith.constant 0 : index
    %c32_134 = arith.constant 32 : index
    %353 = vector.load %arg9[%c0_133, %c32_134] : memref<2x64xf32, #tpu.memory_space<vmem>>, vector<2x32xf32>
    tpu.vector_store %arg9[%c0_133, %c32_134], %319 {strides = array<i32>} : memref<2x64xf32, #tpu.memory_space<vmem>>, vector<2x32xf32>,
    %c0_135 = arith.constant 0 : index
    %c0_136 = arith.constant 0 : index
    %354 = vector.load %arg9[%c0_135, %c0_136] : memref<2x64xf32, #tpu.memory_space<vmem>>, vector<2x64xf32>
    %cst_137 = arith.constant dense<0.000000e+00> : vector<2x128xf32>
    %355 = tpu.matmul %354, %1, %cst_137 {dimension_numbers = #tpu.dot_dimension_numbers<[1], [0], [0], [1], [0, 0, 1, 1], [], []>} : vector<2x64xf32>, vector<64x128xf32>, vector<2x128xf32> -> vector<2x128xf32>
    %356 = arith.addf %355, %8 : vector<2x128xf32>
    %357 = vector.extract_strided_slice %356 {offsets = [0, 0], sizes = [2, 32], strides = [1, 1]} : vector<2x128xf32> to vector<2x32xf32>
    %358 = arith.negf %357 : vector<2x32xf32>
    %359 = math.exp %358 : vector<2x32xf32>
    %cst_138 = arith.constant 1.000000e+00 : f32
    %360 = vector.broadcast %cst_138 : f32 to vector<2x32xf32>
    %361 = arith.addf %360, %359 : vector<2x32xf32>
    %362 = arith.divf %360, %361 : vector<2x32xf32>
    %363 = vector.extract_strided_slice %356 {offsets = [0, 32], sizes = [2, 32], strides = [1, 1]} : vector<2x128xf32> to vector<2x32xf32>
    %364 = arith.negf %363 : vector<2x32xf32>
    %365 = math.exp %364 : vector<2x32xf32>
    %cst_139 = arith.constant 1.000000e+00 : f32
    %366 = vector.broadcast %cst_139 : f32 to vector<2x32xf32>
    %367 = arith.addf %366, %365 : vector<2x32xf32>
    %368 = arith.divf %366, %367 : vector<2x32xf32>
    %369 = vector.extract_strided_slice %356 {offsets = [0, 64], sizes = [2, 32], strides = [1, 1]} : vector<2x128xf32> to vector<2x32xf32>
    %370 = math.tanh %369 : vector<2x32xf32>
    %371 = vector.extract_strided_slice %356 {offsets = [0, 96], sizes = [2, 32], strides = [1, 1]} : vector<2x128xf32> to vector<2x32xf32>
    %372 = arith.negf %371 : vector<2x32xf32>
    %373 = math.exp %372 : vector<2x32xf32>
    %cst_140 = arith.constant 1.000000e+00 : f32
    %374 = vector.broadcast %cst_140 : f32 to vector<2x32xf32>
    %375 = arith.addf %374, %373 : vector<2x32xf32>
    %376 = arith.divf %374, %375 : vector<2x32xf32>
    %377 = arith.mulf %368, %317 : vector<2x32xf32>
    %378 = arith.mulf %362, %370 : vector<2x32xf32>
    %379 = arith.addf %377, %378 : vector<2x32xf32>
    %380 = math.tanh %379 : vector<2x32xf32>
    %381 = arith.mulf %376, %380 : vector<2x32xf32>
    %c0_141 = arith.constant 0 : index
    %c6 = arith.constant 6 : index
    %c0_142 = arith.constant 0 : index
    %382 = vector.load %arg0[%c0_141, %c6, %c0_142] : memref<2x8x4xf32, #tpu.memory_space<vmem>>, vector<2x1x4xf32>
    %383 = vector.shape_cast %382 : vector<2x1x4xf32> to vector<2x4xf32>
    %c0_143 = arith.constant 0 : index
    %c0_144 = arith.constant 0 : index
    %384 = vector.load %arg8[%c0_143, %c0_144] : memref<2x36xf32, #tpu.memory_space<vmem>>, vector<2x4xf32>
    tpu.vector_store %arg8[%c0_143, %c0_144], %383 {strides = array<i32>} : memref<2x36xf32, #tpu.memory_space<vmem>>, vector<2x4xf32>,
    %c0_145 = arith.constant 0 : index
    %c4_146 = arith.constant 4 : index
    %385 = vector.load %arg8[%c0_145, %c4_146] : memref<2x36xf32, #tpu.memory_space<vmem>>, vector<2x32xf32>
    tpu.vector_store %arg8[%c0_145, %c4_146], %351 {strides = array<i32>} : memref<2x36xf32, #tpu.memory_space<vmem>>, vector<2x32xf32>,
    %c0_147 = arith.constant 0 : index
    %c0_148 = arith.constant 0 : index
    %386 = vector.load %arg8[%c0_147, %c0_148] : memref<2x36xf32, #tpu.memory_space<vmem>>, vector<2x36xf32>
    %cst_149 = arith.constant dense<0.000000e+00> : vector<2x128xf32>
    %387 = tpu.matmul %386, %0, %cst_149 {dimension_numbers = #tpu.dot_dimension_numbers<[1], [0], [0], [1], [0, 0, 1, 1], [], []>} : vector<2x36xf32>, vector<36x128xf32>, vector<2x128xf32> -> vector<2x128xf32>
    %388 = arith.addf %387, %5 : vector<2x128xf32>
    %389 = vector.extract_strided_slice %388 {offsets = [0, 0], sizes = [2, 32], strides = [1, 1]} : vector<2x128xf32> to vector<2x32xf32>
    %390 = arith.negf %389 : vector<2x32xf32>
    %391 = math.exp %390 : vector<2x32xf32>
    %cst_150 = arith.constant 1.000000e+00 : f32
    %392 = vector.broadcast %cst_150 : f32 to vector<2x32xf32>
    %393 = arith.addf %392, %391 : vector<2x32xf32>
    %394 = arith.divf %392, %393 : vector<2x32xf32>
    %395 = vector.extract_strided_slice %388 {offsets = [0, 32], sizes = [2, 32], strides = [1, 1]} : vector<2x128xf32> to vector<2x32xf32>
    %396 = arith.negf %395 : vector<2x32xf32>
    %397 = math.exp %396 : vector<2x32xf32>
    %cst_151 = arith.constant 1.000000e+00 : f32
    %398 = vector.broadcast %cst_151 : f32 to vector<2x32xf32>
    %399 = arith.addf %398, %397 : vector<2x32xf32>
    %400 = arith.divf %398, %399 : vector<2x32xf32>
    %401 = vector.extract_strided_slice %388 {offsets = [0, 64], sizes = [2, 32], strides = [1, 1]} : vector<2x128xf32> to vector<2x32xf32>
    %402 = math.tanh %401 : vector<2x32xf32>
    %403 = vector.extract_strided_slice %388 {offsets = [0, 96], sizes = [2, 32], strides = [1, 1]} : vector<2x128xf32> to vector<2x32xf32>
    %404 = arith.negf %403 : vector<2x32xf32>
    %405 = math.exp %404 : vector<2x32xf32>
    %cst_152 = arith.constant 1.000000e+00 : f32
    %406 = vector.broadcast %cst_152 : f32 to vector<2x32xf32>
    %407 = arith.addf %406, %405 : vector<2x32xf32>
    %408 = arith.divf %406, %407 : vector<2x32xf32>
    %409 = arith.mulf %400, %349 : vector<2x32xf32>
    %410 = arith.mulf %394, %402 : vector<2x32xf32>
    %411 = arith.addf %409, %410 : vector<2x32xf32>
    %412 = math.tanh %411 : vector<2x32xf32>
    %413 = arith.mulf %408, %412 : vector<2x32xf32>
    %c0_153 = arith.constant 0 : index
    %c0_154 = arith.constant 0 : index
    %414 = vector.load %arg9[%c0_153, %c0_154] : memref<2x64xf32, #tpu.memory_space<vmem>>, vector<2x32xf32>
    tpu.vector_store %arg9[%c0_153, %c0_154], %413 {strides = array<i32>} : memref<2x64xf32, #tpu.memory_space<vmem>>, vector<2x32xf32>,
    %c0_155 = arith.constant 0 : index
    %c32_156 = arith.constant 32 : index
    %415 = vector.load %arg9[%c0_155, %c32_156] : memref<2x64xf32, #tpu.memory_space<vmem>>, vector<2x32xf32>
    tpu.vector_store %arg9[%c0_155, %c32_156], %381 {strides = array<i32>} : memref<2x64xf32, #tpu.memory_space<vmem>>, vector<2x32xf32>,
    %c0_157 = arith.constant 0 : index
    %c0_158 = arith.constant 0 : index
    %416 = vector.load %arg9[%c0_157, %c0_158] : memref<2x64xf32, #tpu.memory_space<vmem>>, vector<2x64xf32>
    %cst_159 = arith.constant dense<0.000000e+00> : vector<2x128xf32>
    %417 = tpu.matmul %416, %1, %cst_159 {dimension_numbers = #tpu.dot_dimension_numbers<[1], [0], [0], [1], [0, 0, 1, 1], [], []>} : vector<2x64xf32>, vector<64x128xf32>, vector<2x128xf32> -> vector<2x128xf32>
    %418 = arith.addf %417, %8 : vector<2x128xf32>
    %419 = vector.extract_strided_slice %418 {offsets = [0, 0], sizes = [2, 32], strides = [1, 1]} : vector<2x128xf32> to vector<2x32xf32>
    %420 = arith.negf %419 : vector<2x32xf32>
    %421 = math.exp %420 : vector<2x32xf32>
    %cst_160 = arith.constant 1.000000e+00 : f32
    %422 = vector.broadcast %cst_160 : f32 to vector<2x32xf32>
    %423 = arith.addf %422, %421 : vector<2x32xf32>
    %424 = arith.divf %422, %423 : vector<2x32xf32>
    %425 = vector.extract_strided_slice %418 {offsets = [0, 32], sizes = [2, 32], strides = [1, 1]} : vector<2x128xf32> to vector<2x32xf32>
    %426 = arith.negf %425 : vector<2x32xf32>
    %427 = math.exp %426 : vector<2x32xf32>
    %cst_161 = arith.constant 1.000000e+00 : f32
    %428 = vector.broadcast %cst_161 : f32 to vector<2x32xf32>
    %429 = arith.addf %428, %427 : vector<2x32xf32>
    %430 = arith.divf %428, %429 : vector<2x32xf32>
    %431 = vector.extract_strided_slice %418 {offsets = [0, 64], sizes = [2, 32], strides = [1, 1]} : vector<2x128xf32> to vector<2x32xf32>
    %432 = math.tanh %431 : vector<2x32xf32>
    %433 = vector.extract_strided_slice %418 {offsets = [0, 96], sizes = [2, 32], strides = [1, 1]} : vector<2x128xf32> to vector<2x32xf32>
    %434 = arith.negf %433 : vector<2x32xf32>
    %435 = math.exp %434 : vector<2x32xf32>
    %cst_162 = arith.constant 1.000000e+00 : f32
    %436 = vector.broadcast %cst_162 : f32 to vector<2x32xf32>
    %437 = arith.addf %436, %435 : vector<2x32xf32>
    %438 = arith.divf %436, %437 : vector<2x32xf32>
    %439 = arith.mulf %430, %379 : vector<2x32xf32>
    %440 = arith.mulf %424, %432 : vector<2x32xf32>
    %441 = arith.addf %439, %440 : vector<2x32xf32>
    %442 = math.tanh %441 : vector<2x32xf32>
    %443 = arith.mulf %438, %442 : vector<2x32xf32>
    %c0_163 = arith.constant 0 : index
    %c7 = arith.constant 7 : index
    %c0_164 = arith.constant 0 : index
    %444 = vector.load %arg0[%c0_163, %c7, %c0_164] : memref<2x8x4xf32, #tpu.memory_space<vmem>>, vector<2x1x4xf32>
    %445 = vector.shape_cast %444 : vector<2x1x4xf32> to vector<2x4xf32>
    %c0_165 = arith.constant 0 : index
    %c0_166 = arith.constant 0 : index
    %446 = vector.load %arg8[%c0_165, %c0_166] : memref<2x36xf32, #tpu.memory_space<vmem>>, vector<2x4xf32>
    tpu.vector_store %arg8[%c0_165, %c0_166], %445 {strides = array<i32>} : memref<2x36xf32, #tpu.memory_space<vmem>>, vector<2x4xf32>,
    %c0_167 = arith.constant 0 : index
    %c4_168 = arith.constant 4 : index
    %447 = vector.load %arg8[%c0_167, %c4_168] : memref<2x36xf32, #tpu.memory_space<vmem>>, vector<2x32xf32>
    tpu.vector_store %arg8[%c0_167, %c4_168], %413 {strides = array<i32>} : memref<2x36xf32, #tpu.memory_space<vmem>>, vector<2x32xf32>,
    %c0_169 = arith.constant 0 : index
    %c0_170 = arith.constant 0 : index
    %448 = vector.load %arg8[%c0_169, %c0_170] : memref<2x36xf32, #tpu.memory_space<vmem>>, vector<2x36xf32>
    %cst_171 = arith.constant dense<0.000000e+00> : vector<2x128xf32>
    %449 = tpu.matmul %448, %0, %cst_171 {dimension_numbers = #tpu.dot_dimension_numbers<[1], [0], [0], [1], [0, 0, 1, 1], [], []>} : vector<2x36xf32>, vector<36x128xf32>, vector<2x128xf32> -> vector<2x128xf32>
    %450 = arith.addf %449, %5 : vector<2x128xf32>
    %451 = vector.extract_strided_slice %450 {offsets = [0, 0], sizes = [2, 32], strides = [1, 1]} : vector<2x128xf32> to vector<2x32xf32>
    %452 = arith.negf %451 : vector<2x32xf32>
    %453 = math.exp %452 : vector<2x32xf32>
    %cst_172 = arith.constant 1.000000e+00 : f32
    %454 = vector.broadcast %cst_172 : f32 to vector<2x32xf32>
    %455 = arith.addf %454, %453 : vector<2x32xf32>
    %456 = arith.divf %454, %455 : vector<2x32xf32>
    %457 = vector.extract_strided_slice %450 {offsets = [0, 32], sizes = [2, 32], strides = [1, 1]} : vector<2x128xf32> to vector<2x32xf32>
    %458 = arith.negf %457 : vector<2x32xf32>
    %459 = math.exp %458 : vector<2x32xf32>
    %cst_173 = arith.constant 1.000000e+00 : f32
    %460 = vector.broadcast %cst_173 : f32 to vector<2x32xf32>
    %461 = arith.addf %460, %459 : vector<2x32xf32>
    %462 = arith.divf %460, %461 : vector<2x32xf32>
    %463 = vector.extract_strided_slice %450 {offsets = [0, 64], sizes = [2, 32], strides = [1, 1]} : vector<2x128xf32> to vector<2x32xf32>
    %464 = math.tanh %463 : vector<2x32xf32>
    %465 = vector.extract_strided_slice %450 {offsets = [0, 96], sizes = [2, 32], strides = [1, 1]} : vector<2x128xf32> to vector<2x32xf32>
    %466 = arith.negf %465 : vector<2x32xf32>
    %467 = math.exp %466 : vector<2x32xf32>
    %cst_174 = arith.constant 1.000000e+00 : f32
    %468 = vector.broadcast %cst_174 : f32 to vector<2x32xf32>
    %469 = arith.addf %468, %467 : vector<2x32xf32>
    %470 = arith.divf %468, %469 : vector<2x32xf32>
    %471 = arith.mulf %462, %411 : vector<2x32xf32>
    %472 = arith.mulf %456, %464 : vector<2x32xf32>
    %473 = arith.addf %471, %472 : vector<2x32xf32>
    %474 = math.tanh %473 : vector<2x32xf32>
    %475 = arith.mulf %470, %474 : vector<2x32xf32>
    %c0_175 = arith.constant 0 : index
    %c0_176 = arith.constant 0 : index
    %476 = vector.load %arg9[%c0_175, %c0_176] : memref<2x64xf32, #tpu.memory_space<vmem>>, vector<2x32xf32>
    tpu.vector_store %arg9[%c0_175, %c0_176], %475 {strides = array<i32>} : memref<2x64xf32, #tpu.memory_space<vmem>>, vector<2x32xf32>,
    %c0_177 = arith.constant 0 : index
    %c32_178 = arith.constant 32 : index
    %477 = vector.load %arg9[%c0_177, %c32_178] : memref<2x64xf32, #tpu.memory_space<vmem>>, vector<2x32xf32>
    tpu.vector_store %arg9[%c0_177, %c32_178], %443 {strides = array<i32>} : memref<2x64xf32, #tpu.memory_space<vmem>>, vector<2x32xf32>,
    %c0_179 = arith.constant 0 : index
    %c0_180 = arith.constant 0 : index
    %478 = vector.load %arg9[%c0_179, %c0_180] : memref<2x64xf32, #tpu.memory_space<vmem>>, vector<2x64xf32>
    %cst_181 = arith.constant dense<0.000000e+00> : vector<2x128xf32>
    %479 = tpu.matmul %478, %1, %cst_181 {dimension_numbers = #tpu.dot_dimension_numbers<[1], [0], [0], [1], [0, 0, 1, 1], [], []>} : vector<2x64xf32>, vector<64x128xf32>, vector<2x128xf32> -> vector<2x128xf32>
    %480 = arith.addf %479, %8 : vector<2x128xf32>
    %481 = vector.extract_strided_slice %480 {offsets = [0, 0], sizes = [2, 32], strides = [1, 1]} : vector<2x128xf32> to vector<2x32xf32>
    %482 = arith.negf %481 : vector<2x32xf32>
    %483 = math.exp %482 : vector<2x32xf32>
    %cst_182 = arith.constant 1.000000e+00 : f32
    %484 = vector.broadcast %cst_182 : f32 to vector<2x32xf32>
    %485 = arith.addf %484, %483 : vector<2x32xf32>
    %486 = arith.divf %484, %485 : vector<2x32xf32>
    %487 = vector.extract_strided_slice %480 {offsets = [0, 32], sizes = [2, 32], strides = [1, 1]} : vector<2x128xf32> to vector<2x32xf32>
    %488 = arith.negf %487 : vector<2x32xf32>
    %489 = math.exp %488 : vector<2x32xf32>
    %cst_183 = arith.constant 1.000000e+00 : f32
    %490 = vector.broadcast %cst_183 : f32 to vector<2x32xf32>
    %491 = arith.addf %490, %489 : vector<2x32xf32>
    %492 = arith.divf %490, %491 : vector<2x32xf32>
    %493 = vector.extract_strided_slice %480 {offsets = [0, 64], sizes = [2, 32], strides = [1, 1]} : vector<2x128xf32> to vector<2x32xf32>
    %494 = math.tanh %493 : vector<2x32xf32>
    %495 = vector.extract_strided_slice %480 {offsets = [0, 96], sizes = [2, 32], strides = [1, 1]} : vector<2x128xf32> to vector<2x32xf32>
    %496 = arith.negf %495 : vector<2x32xf32>
    %497 = math.exp %496 : vector<2x32xf32>
    %cst_184 = arith.constant 1.000000e+00 : f32
    %498 = vector.broadcast %cst_184 : f32 to vector<2x32xf32>
    %499 = arith.addf %498, %497 : vector<2x32xf32>
    %500 = arith.divf %498, %499 : vector<2x32xf32>
    %501 = arith.mulf %492, %441 : vector<2x32xf32>
    %502 = arith.mulf %486, %494 : vector<2x32xf32>
    %503 = arith.addf %501, %502 : vector<2x32xf32>
    %504 = math.tanh %503 : vector<2x32xf32>
    %505 = arith.mulf %500, %504 : vector<2x32xf32>
    %cst_185 = arith.constant dense<0.000000e+00> : vector<2x1xf32>
    %506 = tpu.matmul %505, %2, %cst_185 {dimension_numbers = #tpu.dot_dimension_numbers<[1], [0], [0], [1], [0, 0, 1, 1], [], []>} : vector<2x32xf32>, vector<32x1xf32>, vector<2x1xf32> -> vector<2x1xf32>
    %c0_186 = arith.constant 0 : index
    %c0_187 = arith.constant 0 : index
    %507 = vector.load %arg6[%c0_186, %c0_187] : memref<1x1xf32, #tpu.memory_space<vmem>>, vector<1x1xf32>
    %508 = vector.broadcast %507 : vector<1x1xf32> to vector<2x1xf32>
    %509 = arith.addf %506, %508 : vector<2x1xf32>
    %c0_188 = arith.constant 0 : index
    %c0_189 = arith.constant 0 : index
    %510 = vector.load %arg7[%c0_188, %c0_189] : memref<2x1xf32, #tpu.memory_space<vmem>>, vector<2x1xf32>
    tpu.vector_store %arg7[%c0_188, %c0_189], %509 {strides = array<i32>} : memref<2x1xf32, #tpu.memory_space<vmem>>, vector<2x1xf32>,
    return
  }
}

</mosaic_0001>

<bundles_post_ra>
// kernel: tpu_custom_call.1
= control target key start
LH: loop header
LB: loop body
LE: loop exit
PB: predicated region body
PF: predicated region fallthrough
CT: control target
= control target key end

     0   :  { %s1955_s0 = inlined_call_operand.vmem [shape: f32[2,8,4], index: 0, kind: input, shape index: {}]   ;;  %s1956_s1 = inlined_call_operand.vmem [shape: f32[36,128], index: 1, kind: input, shape index: {}]   ;;  %s1957_s2 = inlined_call_operand.vmem [shape: f32[1,128], index: 2, kind: input, shape index: {}]   ;;  %s1958_s3 = inlined_call_operand.hbm [shape: f32[64,128], index: 3, kind: input, shape index: {}]   ;;  %s1959_s4 = inlined_call_operand.vmem [shape: f32[1,128], index: 4, kind: input, shape index: {}]   ;;  %s1960_s5 = inlined_call_operand.vmem [shape: f32[32,1], index: 5, kind: input, shape index: {}]   ;;  %s1961_s6 = inlined_call_operand.<no memory space> [shape: f32[1,1], index: 6, kind: input, shape index: {}]   ;;  %s1962_s7 = inlined_call_operand.vmem [shape: f32[2,1], index: 7, kind: output, shape index: {}]  }
   0x1   :  { %v12_v0 = vstv %s1961_s6 }
   0x2   :  { %13 = vst [vmem:[#allocation4] sm:$0x1] %v12_v0 }
   0x3   :  { %14 = vsyncpa [#allocation6], 0  ;;  %s25_s28 = sshll.u32 %s1958_s3, 4  ;;  %s1469_s29 = smov [#allocation5]   ;;  %s26_s28 = int_to_ptr.hbm [resolvable:$true] %s25_s28 }
   0x4   :  { %s27_s30 = sshll.u32 %s1469_s29, 4  ;;  %s1470_s8 = smov 128   ;;  %s28_s30 = int_to_ptr.vmem [resolvable:$true] %s27_s30 }
   0x5   :  { %s1471_s9 = smov 8  }
   0x6   :  { %33 = dma.hbm_to_vmem [thread:$0]  %s26_s28, 1024, %s28_s30, [#allocation6], %s1470_s8, %s1470_s8, %s1471_s9  }
   0x7   :  { %1467 = dma.done.wait [#allocation6], 1024  }
   0x8   :  { %1468 = vsyncadd [#allocation6], 4294966272  ;;  %vm86_vm0 = vcmask 1043456   ;;  %v1525_v1 = vld [vmem:[%s1956_s1 + $0x20] sm:$0xf]  ;;  %v1530_v2 = vld [vmem:[%s1956_s1 + $0x18] sm:$0xff] }
   0x9   :  { %1262 = vmatpush.msk.msra.mxu0 %vm86_vm0, %v1525_v1  ;;  %v1537_v3 = vld [vmem:[%s1956_s1 + $0x10] sm:$0xff]  ;;  %vm74_vm1 = vcmask 1041409   ;;  %1267 = vmatpush.msk.msra.mxu2 %vm86_vm0, %v1525_v1  ;;  %v69_v4 = vld [vmem:[%s1955_s0] sm:$0x1]  ;;  %v70_v5 = vld [vmem:[%s1955_s0 + $0x8] sm:$0x1] }
   0xa   :  { %v73_v6 = vrot.slane %v70_v5, 7  ;;  %vm77_vm2 = vcmask 25600   ;;  %v1552_v7 = vld [vmem:[%s1956_s1 + $0x8] sm:$0xff]  ;;  %vm79_vm3 = vcmask 287776   ;;  %v1560_v9 = vld [vmem:[%s1956_s1] sm:$0xff]  ;;  %v1472_v10 = vmov 0.0  }
   0xb   :  { %102 = vmatpush.msra.mxu0 %v1530_v2  ;;  %245 = vmatpush.msra.mxu2 %v1530_v2  ;;  %vm82_vm4 = vcmask 293888   ;;  %v1585_v12 = vld [vmem:[%s1957_s2] ss:$0 sm:$0xff]  ;;  %s1473_s23 = smov 64   ;;  %s1474_s24 = smov 32   ;;  %v1596_v36 = vld [vmem:[#allocation5 + $0x30] sm:$0xff] }
   0xc   :  { %v75_v8 = vsel %vm74_vm1, %v73_v6, %v69_v4  ;;  %v1594_v35 = vld [vmem:[#allocation5 + $0x38] sm:$0xff]  ;;  %v1600_v37 = vld [vmem:[#allocation5 + $0x28] sm:$0xff]  ;;  %s1475_s25 = smov 36   ;;  %v1611_v40 = vld [vmem:[#allocation5 + $0x20] sm:$0xff]  ;;  %vm151_vm9 = vcmask 254976   ;;  %vm153_vm10 = vcmask 517376  }
   0xd   :  { %103 = vmatpush.msra.mxu0 %v1537_v3  ;;  %246 = vmatpush.msra.mxu2 %v1537_v3  ;;  %78 = vst.msk [vmem:[#allocation2] sm:$0x3] %vm77_vm2, %v75_v8  ;;  %v1615_v41 = vld [vmem:[#allocation5 + $0x18] sm:$0xff]  ;;  %v1620_v42 = vld [vmem:[#allocation5 + $0x10] sm:$0xff]  ;;  %v1625_v43 = vld [vmem:[#allocation5 + $0x8] sm:$0xff]  ;;  %vm156_vm11 = vcmask 523264  }
   0xe   :  { %80 = vst.msk [vmem:[#allocation2] sm:$0x3] %vm79_vm3, %v1472_v10  ;;  %168 = vmatpush.msra.mxu1 %v1594_v35  ;;  %312 = vmatpush.msra.mxu3 %v1594_v35  ;;  %v1630_v44 = vld [vmem:[#allocation5] sm:$0xff]  ;;  %v217_v45 = vld [vmem:[%s1955_s0 + $0x1] sm:$0x1] }
   0xf   :  { %104 = vmatpush.msra.mxu0 %v1552_v7  ;;  %247 = vmatpush.msra.mxu2 %v1552_v7  ;;  %v218_v46 = vld [vmem:[%s1955_s0 + $0x9] sm:$0x1]  ;;  %v362_v51 = vld [vmem:[%s1955_s0 + $0xa] sm:$0x1]  ;;  %v361_v54 = vld [vmem:[%s1955_s0 + $0x2] sm:$0x1] }
  0x10   :  { %169 = vmatpush.msra.mxu1 %v1596_v36  ;;  %313 = vmatpush.msra.mxu3 %v1596_v36  ;;  %v221_v47 = vrot.slane %v218_v46, 7  ;;  %v365_v53 = vrot.slane %v362_v51, 7  ;;  %v1689_v57 = vld [vmem:[%s1959_s4] ss:$0 sm:$0xff] }
  0x11   :  { %105 = vmatpush.msra.mxu0 %v1560_v9  ;;  %248 = vmatpush.msra.mxu2 %v1560_v9 }
  0x12   :  { %170 = vmatpush.msra.mxu1 %v1600_v37  ;;  %314 = vmatpush.msra.mxu3 %v1600_v37  ;;  %v222_v48 = vsel %vm74_vm1, %v221_v47, %v217_v45  ;;  %v366_v55 = vsel %vm74_vm1, %v365_v53, %v361_v54 }
  0x13   :  { %1272 = vmatpush.msk.msrb.mxu0 %vm86_vm0, %v1525_v1  ;;  %456 = vmatpush.msrb.mxu2 %v1594_v35 }
  0x14   :  { %171 = vmatpush.msra.mxu1 %v1611_v40  ;;  %315 = vmatpush.msra.mxu3 %v1611_v40 }
  0x15   :  { %389 = vmatpush.msrb.mxu0 %v1530_v2  ;;  %v81_v11 = vld [vmem:[#allocation2] sm:$0x3]  ;;  %457 = vmatpush.msrb.mxu2 %v1596_v36 }
  0x16   :  { %1263 = vmatmul.msk.f32.vlgmr.msra.gmra.mxu0 %vm82_vm4, %v81_v11  ;;  %172 = vmatpush.msra.mxu1 %v1615_v41  ;;  %224 = vst.msk [vmem:[#allocation2] sm:$0x3] %vm77_vm2, %v222_v48 }
  0x17   :  { %390 = vmatpush.msrb.mxu0 %v1537_v3  ;;  %458 = vmatpush.msrb.mxu2 %v1600_v37 }
  0x18   :  { %316 = vmatpush.msra.mxu3 %v1615_v41  ;;  %173 = vmatpush.msra.mxu1 %v1620_v42 }
  0x19   :  { %391 = vmatpush.msrb.mxu0 %v1552_v7  ;;  %459 = vmatpush.msrb.mxu2 %v1611_v40 }
  0x1a   :  { %317 = vmatpush.msra.mxu3 %v1620_v42  ;;  %174 = vmatpush.msra.mxu1 %v1625_v43 }
  0x1b   :  { %392 = vmatpush.msrb.mxu0 %v1560_v9  ;;  %460 = vmatpush.msrb.mxu2 %v1615_v41 }
  0x1c   :  { %318 = vmatpush.msra.mxu3 %v1625_v43  ;;  %175 = vmatpush.msra.mxu1 %v1630_v44 }
  0x1d   :  { %1282 = vmatpush.msk.msra.mxu0 %vm86_vm0, %v1525_v1  ;;  %461 = vmatpush.msrb.mxu2 %v1620_v42 }
  0x1e   :  { %319 = vmatpush.msra.mxu3 %v1630_v44  ;;  %1277 = vmatpush.msk.msrb.mxu1 %vm86_vm0, %v1525_v1 }
  0x1f   :  { %677 = vmatpush.msra.mxu0 %v1530_v2  ;;  %462 = vmatpush.msrb.mxu2 %v1625_v43 }
  0x20   :  { %600 = vmatpush.msrb.mxu3 %v1594_v35  ;;  %533 = vmatpush.msrb.mxu1 %v1530_v2 }
  0x21   :  { %678 = vmatpush.msra.mxu0 %v1537_v3  ;;  %463 = vmatpush.msrb.mxu2 %v1630_v44 }
  0x22   :  { %601 = vmatpush.msrb.mxu3 %v1596_v36  ;;  %534 = vmatpush.msrb.mxu1 %v1537_v3 }
  0x23   :  { %679 = vmatpush.msra.mxu0 %v1552_v7 }
  0x24   :  { %602 = vmatpush.msrb.mxu3 %v1600_v37  ;;  %535 = vmatpush.msrb.mxu1 %v1552_v7 }
  0x25   :  { %680 = vmatpush.msra.mxu0 %v1560_v9 }
  0x26   :  { %603 = vmatpush.msrb.mxu3 %v1611_v40  ;;  %536 = vmatpush.msrb.mxu1 %v1560_v9 }
  0x28   :  { %604 = vmatpush.msrb.mxu3 %v1615_v41 }
  0x2a   :  { %605 = vmatpush.msrb.mxu3 %v1620_v42 }
  0x2c   :  { %606 = vmatpush.msrb.mxu3 %v1625_v43 }
  0x2e   :  { %607 = vmatpush.msrb.mxu3 %v1630_v44 }
  0x93   :  { %v107_v13 = vpop.f32.mrf.mxu0 }
  0x94   :  { %v108_v14 = vadd.f32 %v1585_v12, %v107_v13 }
  0x96   :  { %1313 = vtanh.f32 %v108_v14  ;;  %v1264_v16 = vmul.f32 -1.442695, %v108_v14 }
  0x98   :  { %1315 = vpow2.f32 %v1264_v16 }
  0x9c   :  { %v1314_v15 = vpop.eup %1313 }
  0x9d   :  { %132 = vrot.lane.b32.xlu0 %v1314_v15, %s1473_s23 }
  0x9e   :  { %v1316_v17 = vpop.eup %1315 }
  0x9f   :  { %v113_v18 = vadd.f32 1.0, %v1316_v17 }
  0xa1   :  { %1317 = vrcp.f32 %v113_v18  ;;  %v125_v24 = vand.u32 2147483648, %v113_v18  ;;  %vm119_vm6 = vweird.f32 %v113_v18  ;;  %v123_v25 = vand.u32 2147483647, %v113_v18 }
  0xa3   :  { %v126_v27 = vor.u32 1.1754944e-38, %v125_v24  ;;  %vm124_vm8 = vcmp.eq.f32.partialorder %v123_v25, 8.507059e+37 }
  0xa7   :  { %v1318_v19 = vpop.eup %1317 }
  0xa8   :  { %v115_v20 = vmul.f32 %v1318_v19, %v113_v18  ;;  %vm120_vm5 = vweird.f32 %v1318_v19 }
  0xa9   :  { %vm121_vm7 = vmor %vm119_vm6, %vm120_vm5 }
  0xaa   :  { %v116_v21 = vsub.f32 1.0, %v115_v20 }
  0xac   :  { %v117_v22 = vmul.f32 %v1318_v19, %v116_v21 }
  0xae   :  { %v118_v23 = vadd.f32 %v1318_v19, %v117_v22 }
  0xb0   :  { %v122_v26 = vsel %vm121_vm7, %v1318_v19, %v118_v23 }
  0xb1   :  { %v127_v29 = vsel %vm124_vm8, %v126_v27, %v122_v26 }
  0xb2   :  { %v130_v31 = vmul.f32 0.0, %v127_v29 }
 0x10f   :  { %v133_v28 = vpop.permute.xlu0 %132 }
 0x110   :  { %v135_v30 = vmul.f32 %v133_v28, %v127_v29 }
 0x112   :  { %137 = vrot.lane.b32.xlu0 %v135_v30, %s1474_s24 }
 0x184   :  { %v138_v32 = vpop.permute.xlu0 %137 }
 0x185   :  { %v1590_v33 = vadd.f32 %v138_v32, %v130_v31 }
 0x187   :  { %1319 = vtanh.f32 %v1590_v33 }
 0x18d   :  { %v1320_v34 = vpop.eup %1319 }
 0x18e   :  { %143 = vrot.lane.b32.xlu1 %v1320_v34, %s1473_s23 }
 0x200   :  { %v144_v38 = vpop.permute.xlu1 %143 }
 0x201   :  { %v146_v39 = vmul.f32 %v144_v38, %v127_v29 }
 0x203   :  { %148 = vrot.lane.b32.xlu2 %v146_v39, %s1474_s24  ;;  %225 = vrot.lane.b32.xlu1 %v146_v39, %s1475_s25 }
 0x25d   :  { %v149_v49 = vpop.permute.xlu2 %148 }
 0x25e   :  { %152 = vst.msk [vmem:[#allocation3] sm:$0x3] %vm151_vm9, %v149_v49 }
 0x25f   :  { %154 = vst.msk [vmem:[#allocation3] sm:$0x3] %vm153_vm10, %v1472_v10 }
 0x266   :  { %v155_v50 = vld [vmem:[#allocation3] sm:$0x3] }
 0x267   :  { %1265 = vmatmul.msk.f32.vlgmr.msra.gmra.mxu1 %vm156_vm11, %v155_v50 }
 0x268   :  { %744 = vmatpush.msra.mxu1 %v1594_v35 }
 0x26a   :  { %745 = vmatpush.msra.mxu1 %v1596_v36 }
 0x26c   :  { %746 = vmatpush.msra.mxu1 %v1600_v37 }
 0x26e   :  { %747 = vmatpush.msra.mxu1 %v1611_v40 }
 0x270   :  { %748 = vmatpush.msra.mxu1 %v1615_v41 }
 0x272   :  { %749 = vmatpush.msra.mxu1 %v1620_v42 }
 0x274   :  { %750 = vmatpush.msra.mxu1 %v1625_v43 }
 0x275   :  { %v226_v52 = vpop.permute.xlu1 %225 }
 0x276   :  { %228 = vst.msk [vmem:[#allocation2] sm:$0x3] %vm79_vm3, %v226_v52  ;;  %751 = vmatpush.msra.mxu1 %v1630_v44 }
 0x27d   :  { %v229_v56 = vld [vmem:[#allocation2] sm:$0x3] }
 0x27e   :  { %368 = vst.msk [vmem:[#allocation2] sm:$0x3] %vm77_vm2, %v366_v55  ;;  %1268 = vmatmul.msk.f32.vlgmr.msra.gmra.mxu2 %vm82_vm4, %v229_v56 }
 0x27f   :  { %1287 = vmatpush.msk.msra.mxu2 %vm86_vm0, %v1525_v1 }
 0x281   :  { %821 = vmatpush.msra.mxu2 %v1530_v2 }
 0x283   :  { %822 = vmatpush.msra.mxu2 %v1537_v3 }
 0x285   :  { %823 = vmatpush.msra.mxu2 %v1552_v7 }
 0x287   :  { %824 = vmatpush.msra.mxu2 %v1560_v9 }
 0x2e4   :  { %v177_v58 = vpop.f32.mrf.mxu1 }
 0x2e5   :  { %v178_v59 = vadd.f32 %v1689_v57, %v177_v58 }
 0x2e7   :  { %1321 = vtanh.f32 %v178_v59  ;;  %v1266_v0 = vmul.f32 -1.442695, %v178_v59 }
 0x2ed   :  { %v1322_v60 = vpop.eup %1321 }
 0x2ee   :  { %202 = vrot.lane.b32.xlu0 %v1322_v60, %s1473_s23  ;;  %v506_v60 = vld [vmem:[%s1955_s0 + $0xb] sm:$0x1] }
 0x301   :  { %v250_v61 = vpop.f32.mrf.mxu2 }
 0x302   :  { %v251_v62 = vadd.f32 %v1585_v12, %v250_v61 }
 0x304   :  { %1323 = vtanh.f32 %v251_v62  ;;  %v1269_v4 = vmul.f32 -1.442695, %v251_v62  ;;  %v509_v62 = vrot.slane %v506_v60, 7 }
 0x305   :  { %1325 = vpow2.f32 %v1266_v0 }
 0x306   :  { %1327 = vpow2.f32 %v1269_v4 }
 0x30a   :  { %v1324_v63 = vpop.eup %1323 }
 0x30b   :  { %275 = vrot.lane.b32.xlu2 %v1324_v63, %s1473_s23  ;;  %v1326_v5 = vpop.eup %1325  ;;  %v505_v63 = vld [vmem:[%s1955_s0 + $0x3] sm:$0x1] }
 0x30c   :  { %v183_v6 = vadd.f32 1.0, %v1326_v5  ;;  %v1328_v8 = vpop.eup %1327  ;;  %v510_v0 = vsel %vm74_vm1, %v509_v62, %v505_v63 }
 0x30d   :  { %v256_v10 = vadd.f32 1.0, %v1328_v8 }
 0x30e   :  { %1329 = vrcp.f32 %v183_v6  ;;  %vm189_vm12 = vweird.f32 %v183_v6  ;;  %v195_v19 = vand.u32 2147483648, %v183_v6  ;;  %v193_v21 = vand.u32 2147483647, %v183_v6 }
 0x30f   :  { %1331 = vrcp.f32 %v256_v10  ;;  %v268_v26 = vand.u32 2147483648, %v256_v10  ;;  %vm262_vm6 = vweird.f32 %v256_v10  ;;  %v266_v29 = vand.u32 2147483647, %v256_v10 }
 0x310   :  { %v196_v23 = vor.u32 1.1754944e-38, %v195_v19  ;;  %vm194_vm15 = vcmp.eq.f32.partialorder %v193_v21, 8.507059e+37 }
 0x311   :  { %v269_v32 = vor.u32 1.1754944e-38, %v268_v26  ;;  %vm267_vm8 = vcmp.eq.f32.partialorder %v266_v29, 8.507059e+37 }
 0x314   :  { %v1330_v11 = vpop.eup %1329 }
 0x315   :  { %v185_v13 = vmul.f32 %v1330_v11, %v183_v6  ;;  %v1332_v14 = vpop.eup %1331  ;;  %vm190_vm13 = vweird.f32 %v1330_v11 }
 0x316   :  { %v258_v16 = vmul.f32 %v1332_v14, %v256_v10  ;;  %vm191_vm14 = vmor %vm189_vm12, %vm190_vm13  ;;  %vm263_vm5 = vweird.f32 %v1332_v14 }
 0x317   :  { %v186_v15 = vsub.f32 1.0, %v185_v13  ;;  %vm264_vm7 = vmor %vm262_vm6, %vm263_vm5 }
 0x318   :  { %v259_v18 = vsub.f32 1.0, %v258_v16 }
 0x319   :  { %v187_v17 = vmul.f32 %v1330_v11, %v186_v15 }
 0x31a   :  { %v260_v22 = vmul.f32 %v1332_v14, %v259_v18 }
 0x31b   :  { %v188_v20 = vadd.f32 %v1330_v11, %v187_v17 }
 0x31c   :  { %v261_v25 = vadd.f32 %v1332_v14, %v260_v22 }
 0x31d   :  { %v192_v24 = vsel %vm191_vm14, %v1330_v11, %v188_v20 }
 0x31e   :  { %v197_v28 = vsel %vm194_vm15, %v196_v23, %v192_v24  ;;  %v265_v31 = vsel %vm264_vm7, %v1332_v14, %v261_v25 }
 0x31f   :  { %v270_v38 = vsel %vm267_vm8, %v269_v32, %v265_v31  ;;  %v200_v45 = vmul.f32 0.0, %v197_v28 }
 0x320   :  { %v273_v49 = vmul.f32 %v270_v38, %v1590_v33 }
 0x360   :  { %v203_v27 = vpop.permute.xlu0 %202 }
 0x361   :  { %v205_v30 = vmul.f32 %v203_v27, %v197_v28 }
 0x363   :  { %207 = vrot.lane.b32.xlu2 %v205_v30, %s1474_s24 }
 0x365   :  { %v276_v34 = vpop.permute.xlu2 %275 }
 0x366   :  { %v278_v39 = vmul.f32 %v276_v34, %v270_v38 }
 0x368   :  { %280 = vrot.lane.b32.xlu1 %v278_v39, %s1474_s24 }
 0x3bd   :  { %v208_v46 = vpop.permute.xlu2 %207 }
 0x3be   :  { %v1697_v47 = vadd.f32 %v208_v46, %v200_v45 }
 0x3c0   :  { %1333 = vtanh.f32 %v1697_v47 }
 0x3c6   :  { %v1334_v48 = vpop.eup %1333 }
 0x3c7   :  { %213 = vrot.lane.b32.xlu1 %v1334_v48, %s1473_s23 }
 0x3da   :  { %v281_v50 = vpop.permute.xlu1 %280 }
 0x3db   :  { %v1702_v51 = vadd.f32 %v281_v50, %v273_v49 }
 0x3dd   :  { %1335 = vtanh.f32 %v1702_v51 }
 0x3e3   :  { %v1336_v52 = vpop.eup %1335 }
 0x3e4   :  { %286 = vrot.lane.b32.xlu0 %v1336_v52, %s1473_s23 }
 0x439   :  { %v214_v53 = vpop.permute.xlu1 %213 }
 0x43a   :  { %v216_v54 = vmul.f32 %v214_v53, %v197_v28 }
 0x43c   :  { %296 = vrot.lane.b32.xlu0 %v216_v54, %s1473_s23 }
 0x456   :  { %v287_v55 = vpop.permute.xlu0 %286 }
 0x457   :  { %v289_v56 = vmul.f32 %v287_v55, %v270_v38 }
 0x459   :  { %369 = vrot.lane.b32.xlu1 %v289_v56, %s1475_s25  ;;  %291 = vrot.lane.b32.xlu2 %v289_v56, %s1474_s24 }
 0x4ae   :  { %v297_v33 = vpop.permute.xlu0 %296 }
 0x4b3   :  { %v292_v58 = vpop.permute.xlu2 %291 }
 0x4b4   :  { %294 = vst.msk [vmem:[#allocation3] sm:$0x3] %vm151_vm9, %v292_v58 }
 0x4b5   :  { %299 = vst.msk [vmem:[#allocation3] sm:$0x3] %vm153_vm10, %v297_v33 }
 0x4bc   :  { %v300_v59 = vld [vmem:[#allocation3] sm:$0x3] }
 0x4bd   :  { %1270 = vmatmul.msk.f32.vlgmr.msra.gmra.mxu3 %vm156_vm11, %v300_v59 }
 0x4be   :  { %1292 = vmatpush.msk.msra.mxu3 %vm86_vm0, %v1525_v1 }
 0x4c0   :  { %965 = vmatpush.msra.mxu3 %v1530_v2 }
 0x4c2   :  { %966 = vmatpush.msra.mxu3 %v1537_v3 }
 0x4c4   :  { %967 = vmatpush.msra.mxu3 %v1552_v7 }
 0x4c6   :  { %968 = vmatpush.msra.mxu3 %v1560_v9 }
 0x4cb   :  { %v370_v61 = vpop.permute.xlu1 %369 }
 0x4cc   :  { %372 = vst.msk [vmem:[#allocation2] sm:$0x3] %vm79_vm3, %v370_v61 }
 0x4d3   :  { %v373_v4 = vld [vmem:[#allocation2] sm:$0x3] }
 0x4d4   :  { %512 = vst.msk [vmem:[#allocation2] sm:$0x3] %vm77_vm2, %v510_v0  ;;  %1273 = vmatmul.msk.f32.vlgmr.msrb.gmra.mxu0 %vm82_vm4, %v373_v4 }
 0x4d5   :  { %888 = vmatpush.msrb.mxu0 %v1594_v35 }
 0x4d7   :  { %889 = vmatpush.msrb.mxu0 %v1596_v36 }
 0x4d9   :  { %890 = vmatpush.msrb.mxu0 %v1600_v37 }
 0x4db   :  { %891 = vmatpush.msrb.mxu0 %v1611_v40 }
 0x4dd   :  { %892 = vmatpush.msrb.mxu0 %v1615_v41 }
 0x4df   :  { %893 = vmatpush.msrb.mxu0 %v1620_v42 }
 0x4e1   :  { %894 = vmatpush.msrb.mxu0 %v1625_v43 }
 0x4e3   :  { %895 = vmatpush.msrb.mxu0 %v1630_v44 }
 0x540   :  { %v321_v5 = vpop.f32.mrf.mxu3 }
 0x541   :  { %v322_v6 = vadd.f32 %v1689_v57, %v321_v5 }
 0x543   :  { %1337 = vtanh.f32 %v322_v6  ;;  %v1271_v15 = vmul.f32 -1.442695, %v322_v6 }
 0x549   :  { %v1338_v8 = vpop.eup %1337 }
 0x54a   :  { %346 = vrot.lane.b32.xlu0 %v1338_v8, %s1473_s23 }
 0x551   :  { %v394_v10 = vpop.f32.mrf.mxu0 }
 0x552   :  { %v395_v11 = vadd.f32 %v1585_v12, %v394_v10 }
 0x554   :  { %1339 = vtanh.f32 %v395_v11  ;;  %v1274_v14 = vmul.f32 -1.442695, %v395_v11 }
 0x556   :  { %1341 = vpow2.f32 %v1274_v14 }
 0x557   :  { %1343 = vpow2.f32 %v1271_v15 }
 0x55a   :  { %v1340_v13 = vpop.eup %1339 }
 0x55b   :  { %419 = vrot.lane.b32.xlu2 %v1340_v13, %s1473_s23 }
 0x55c   :  { %v1342_v16 = vpop.eup %1341 }
 0x55d   :  { %v400_v17 = vadd.f32 1.0, %v1342_v16  ;;  %v1344_v18 = vpop.eup %1343 }
 0x55e   :  { %v327_v19 = vadd.f32 1.0, %v1344_v18 }
 0x55f   :  { %1345 = vrcp.f32 %v400_v17  ;;  %v412_v28 = vand.u32 2147483648, %v400_v17  ;;  %vm406_vm13 = vweird.f32 %v400_v17  ;;  %v410_v29 = vand.u32 2147483647, %v400_v17 }
 0x560   :  { %1347 = vrcp.f32 %v327_v19  ;;  %v339_v46 = vand.u32 2147483648, %v327_v19  ;;  %vm333_vm6 = vweird.f32 %v327_v19  ;;  %v337_v48 = vand.u32 2147483647, %v327_v19 }
 0x561   :  { %v413_v32 = vor.u32 1.1754944e-38, %v412_v28  ;;  %vm411_vm15 = vcmp.eq.f32.partialorder %v410_v29, 8.507059e+37 }
 0x562   :  { %v340_v50 = vor.u32 1.1754944e-38, %v339_v46  ;;  %vm338_vm8 = vcmp.eq.f32.partialorder %v337_v48, 8.507059e+37 }
 0x565   :  { %v1346_v20 = vpop.eup %1345 }
 0x566   :  { %v402_v21 = vmul.f32 %v1346_v20, %v400_v17  ;;  %v1348_v22 = vpop.eup %1347  ;;  %vm407_vm12 = vweird.f32 %v1346_v20 }
 0x567   :  { %v329_v24 = vmul.f32 %v1348_v22, %v327_v19  ;;  %vm408_vm14 = vmor %vm406_vm13, %vm407_vm12  ;;  %vm334_vm5 = vweird.f32 %v1348_v22 }
 0x568   :  { %v403_v23 = vsub.f32 1.0, %v402_v21  ;;  %vm335_vm7 = vmor %vm333_vm6, %vm334_vm5 }
 0x569   :  { %v330_v26 = vsub.f32 1.0, %v329_v24 }
 0x56a   :  { %v404_v25 = vmul.f32 %v1346_v20, %v403_v23 }
 0x56b   :  { %v331_v30 = vmul.f32 %v1348_v22, %v330_v26 }
 0x56c   :  { %v405_v27 = vadd.f32 %v1346_v20, %v404_v25 }
 0x56d   :  { %v332_v39 = vadd.f32 %v1348_v22, %v331_v30 }
 0x56e   :  { %v409_v31 = vsel %vm408_vm14, %v1346_v20, %v405_v27 }
 0x56f   :  { %v414_v34 = vsel %vm411_vm15, %v413_v32, %v409_v31  ;;  %v336_v49 = vsel %vm335_vm7, %v1348_v22, %v332_v39 }
 0x570   :  { %v341_v53 = vsel %vm338_vm8, %v340_v50, %v336_v49  ;;  %v417_v59 = vmul.f32 %v414_v34, %v1702_v51 }
 0x571   :  { %v344_v55 = vmul.f32 %v341_v53, %v1697_v47 }
 0x5b5   :  { %v420_v38 = vpop.permute.xlu2 %419 }
 0x5b6   :  { %v422_v45 = vmul.f32 %v420_v38, %v414_v34 }
 0x5b8   :  { %424 = vrot.lane.b32.xlu1 %v422_v45, %s1474_s24 }
 0x5bc   :  { %v347_v52 = vpop.permute.xlu0 %346 }
 0x5bd   :  { %v349_v54 = vmul.f32 %v347_v52, %v341_v53 }
 0x5bf   :  { %351 = vrot.lane.b32.xlu2 %v349_v54, %s1474_s24 }
 0x619   :  { %v352_v56 = vpop.permute.xlu2 %351 }
 0x61a   :  { %v1743_v58 = vadd.f32 %v352_v56, %v344_v55 }
 0x61c   :  { %1349 = vtanh.f32 %v1743_v58 }
 0x622   :  { %v1350_v33 = vpop.eup %1349 }
 0x623   :  { %357 = vrot.lane.b32.xlu1 %v1350_v33, %s1473_s23 }
 0x62a   :  { %v425_v60 = vpop.permute.xlu1 %424 }
 0x62b   :  { %v1748_v61 = vadd.f32 %v425_v60, %v417_v59 }
 0x62d   :  { %1351 = vtanh.f32 %v1748_v61 }
 0x633   :  { %v1352_v62 = vpop.eup %1351 }
 0x634   :  { %430 = vrot.lane.b32.xlu0 %v1352_v62, %s1473_s23 }
 0x695   :  { %v358_v63 = vpop.permute.xlu1 %357 }
 0x696   :  { %v360_v47 = vmul.f32 %v358_v63, %v341_v53 }
 0x698   :  { %440 = vrot.lane.b32.xlu1 %v360_v47, %s1473_s23  ;;  %v650_v47 = vld [vmem:[%s1955_s0 + $0xc] sm:$0x1] }
 0x6a6   :  { %v431_v0 = vpop.permute.xlu0 %430 }
 0x6a7   :  { %v433_v4 = vmul.f32 %v431_v0, %v414_v34  ;;  %v653_v0 = vrot.slane %v650_v47, 7 }
 0x6a9   :  { %513 = vrot.lane.b32.xlu0 %v433_v4, %s1475_s25  ;;  %435 = vrot.lane.b32.xlu2 %v433_v4, %s1474_s24 }
 0x703   :  { %v436_v5 = vpop.permute.xlu2 %435 }
 0x704   :  { %438 = vst.msk [vmem:[#allocation3] sm:$0x3] %vm151_vm9, %v436_v5 }
 0x70a   :  { %v441_v51 = vpop.permute.xlu1 %440 }
 0x70b   :  { %443 = vst.msk [vmem:[#allocation3] sm:$0x3] %vm153_vm10, %v441_v51 }
 0x712   :  { %v444_v6 = vld [vmem:[#allocation3] sm:$0x3] }
 0x713   :  { %1275 = vmatmul.msk.f32.vlgmr.msrb.gmra.mxu2 %vm156_vm11, %v444_v6 }
 0x714   :  { %1032 = vmatpush.msrb.mxu2 %v1594_v35 }
 0x716   :  { %1033 = vmatpush.msrb.mxu2 %v1596_v36 }
 0x718   :  { %1034 = vmatpush.msrb.mxu2 %v1600_v37 }
 0x71a   :  { %1035 = vmatpush.msrb.mxu2 %v1611_v40 }
 0x71b   :  { %v514_v8 = vpop.permute.xlu0 %513 }
 0x71c   :  { %516 = vst.msk [vmem:[#allocation2] sm:$0x3] %vm79_vm3, %v514_v8  ;;  %1036 = vmatpush.msrb.mxu2 %v1615_v41  ;;  %v794_v8 = vld [vmem:[%s1955_s0 + $0xd] sm:$0x1] }
 0x71e   :  { %1037 = vmatpush.msrb.mxu2 %v1620_v42 }
 0x720   :  { %1038 = vmatpush.msrb.mxu2 %v1625_v43 }
 0x722   :  { %1039 = vmatpush.msrb.mxu2 %v1630_v44 }
 0x723   :  { %v517_v10 = vld [vmem:[#allocation2] sm:$0x3] }
 0x724   :  { %1278 = vmatmul.msk.f32.vlgmr.msrb.gmra.mxu1 %vm82_vm4, %v517_v10 }
 0x725   :  { %1297 = vmatpush.msk.msrb.mxu1 %vm86_vm0, %v1525_v1 }
 0x727   :  { %1109 = vmatpush.msrb.mxu1 %v1530_v2 }
 0x729   :  { %1110 = vmatpush.msrb.mxu1 %v1537_v3 }
 0x72b   :  { %1111 = vmatpush.msrb.mxu1 %v1552_v7 }
 0x72d   :  { %1112 = vmatpush.msrb.mxu1 %v1560_v9 }
 0x796   :  { %v465_v11 = vpop.f32.mrf.mxu2 }
 0x797   :  { %v466_v13 = vadd.f32 %v1689_v57, %v465_v11  ;;  %v797_v11 = vrot.slane %v794_v8, 7 }
 0x799   :  { %1353 = vtanh.f32 %v466_v13  ;;  %v1276_v7 = vmul.f32 -1.442695, %v466_v13  ;;  %v793_v13 = vld [vmem:[%s1955_s0 + $0x5] sm:$0x1] }
 0x79f   :  { %v1354_v14 = vpop.eup %1353 }
 0x7a0   :  { %490 = vrot.lane.b32.xlu0 %v1354_v14, %s1473_s23  ;;  %v798_v14 = vsel %vm74_vm1, %v797_v11, %v793_v13 }
 0x7a1   :  { %v538_v15 = vpop.f32.mrf.mxu1 }
 0x7a2   :  { %v539_v16 = vadd.f32 %v1585_v12, %v538_v15 }
 0x7a4   :  { %1355 = vtanh.f32 %v539_v16  ;;  %v1279_v2 = vmul.f32 -1.442695, %v539_v16 }
 0x7a6   :  { %1357 = vpow2.f32 %v1279_v2 }
 0x7a7   :  { %1359 = vpow2.f32 %v1276_v7 }
 0x7aa   :  { %v1356_v1 = vpop.eup %1355 }
 0x7ab   :  { %563 = vrot.lane.b32.xlu2 %v1356_v1, %s1473_s23 }
 0x7ac   :  { %v1358_v3 = vpop.eup %1357 }
 0x7ad   :  { %v544_v17 = vadd.f32 1.0, %v1358_v3  ;;  %v1360_v9 = vpop.eup %1359 }
 0x7ae   :  { %v471_v19 = vadd.f32 1.0, %v1360_v9 }
 0x7af   :  { %1361 = vrcp.f32 %v544_v17  ;;  %v556_v26 = vand.u32 2147483648, %v544_v17  ;;  %vm550_vm12 = vweird.f32 %v544_v17  ;;  %v554_v27 = vand.u32 2147483647, %v544_v17 }
 0x7b0   :  { %1363 = vrcp.f32 %v471_v19  ;;  %v483_v45 = vand.u32 2147483648, %v471_v19  ;;  %vm477_vm5 = vweird.f32 %v471_v19  ;;  %v481_v46 = vand.u32 2147483647, %v471_v19 }
 0x7b1   :  { %v557_v30 = vor.u32 1.1754944e-38, %v556_v26  ;;  %vm555_vm14 = vcmp.eq.f32.partialorder %v554_v27, 8.507059e+37 }
 0x7b2   :  { %v484_v49 = vor.u32 1.1754944e-38, %v483_v45  ;;  %vm482_vm7 = vcmp.eq.f32.partialorder %v481_v46, 8.507059e+37 }
 0x7b5   :  { %v1362_v18 = vpop.eup %1361 }
 0x7b6   :  { %v546_v20 = vmul.f32 %v1362_v18, %v544_v17  ;;  %v1364_v23 = vpop.eup %1363  ;;  %vm551_vm0 = vweird.f32 %v1362_v18 }
 0x7b7   :  { %v473_v25 = vmul.f32 %v1364_v23, %v471_v19  ;;  %vm552_vm13 = vmor %vm550_vm12, %vm551_vm0  ;;  %vm478_vm15 = vweird.f32 %v1364_v23 }
 0x7b8   :  { %v547_v21 = vsub.f32 1.0, %v546_v20  ;;  %vm479_vm6 = vmor %vm477_vm5, %vm478_vm15 }
 0x7b9   :  { %v474_v29 = vsub.f32 1.0, %v473_v25 }
 0x7ba   :  { %v548_v22 = vmul.f32 %v1362_v18, %v547_v21 }
 0x7bb   :  { %v475_v38 = vmul.f32 %v1364_v23, %v474_v29 }
 0x7bc   :  { %v549_v24 = vadd.f32 %v1362_v18, %v548_v22 }
 0x7bd   :  { %v476_v39 = vadd.f32 %v1364_v23, %v475_v38 }
 0x7be   :  { %v553_v28 = vsel %vm552_vm13, %v1362_v18, %v549_v24 }
 0x7bf   :  { %v558_v31 = vsel %vm555_vm14, %v557_v30, %v553_v28  ;;  %v480_v48 = vsel %vm479_vm6, %v1364_v23, %v476_v39 }
 0x7c0   :  { %v485_v52 = vsel %vm482_vm7, %v484_v49, %v480_v48  ;;  %v561_v59 = vmul.f32 %v558_v31, %v1748_v61 }
 0x7c1   :  { %v488_v54 = vmul.f32 %v485_v52, %v1743_v58  ;;  %v649_v58 = vld [vmem:[%s1955_s0 + $0x4] sm:$0x1] }
 0x7c2   :  { %v654_v4 = vsel %vm74_vm1, %v653_v0, %v649_v58 }
 0x7c3   :  { %656 = vst.msk [vmem:[#allocation2] sm:$0x3] %vm77_vm2, %v654_v4 }
 0x805   :  { %v564_v32 = vpop.permute.xlu2 %563 }
 0x806   :  { %v566_v34 = vmul.f32 %v564_v32, %v558_v31 }
 0x808   :  { %568 = vrot.lane.b32.xlu1 %v566_v34, %s1474_s24 }
 0x812   :  { %v491_v50 = vpop.permute.xlu0 %490 }
 0x813   :  { %v493_v53 = vmul.f32 %v491_v50, %v485_v52 }
 0x815   :  { %495 = vrot.lane.b32.xlu2 %v493_v53, %s1474_s24 }
 0x86f   :  { %v496_v55 = vpop.permute.xlu2 %495 }
 0x870   :  { %v1781_v56 = vadd.f32 %v496_v55, %v488_v54 }
 0x872   :  { %1365 = vtanh.f32 %v1781_v56 }
 0x878   :  { %v1366_v33 = vpop.eup %1365 }
 0x879   :  { %501 = vrot.lane.b32.xlu1 %v1366_v33, %s1473_s23 }
 0x87a   :  { %v569_v60 = vpop.permute.xlu1 %568 }
 0x87b   :  { %v1786_v62 = vadd.f32 %v569_v60, %v561_v59 }
 0x87d   :  { %1367 = vtanh.f32 %v1786_v62 }
 0x883   :  { %v1368_v63 = vpop.eup %1367 }
 0x884   :  { %574 = vrot.lane.b32.xlu0 %v1368_v63, %s1473_s23 }
 0x8eb   :  { %v502_v61 = vpop.permute.xlu1 %501 }
 0x8ec   :  { %v504_v5 = vmul.f32 %v502_v61, %v485_v52 }
 0x8ee   :  { %584 = vrot.lane.b32.xlu1 %v504_v5, %s1473_s23 }
 0x8f6   :  { %v575_v51 = vpop.permute.xlu0 %574 }
 0x8f7   :  { %v577_v6 = vmul.f32 %v575_v51, %v558_v31  ;;  %v937_v51 = vld [vmem:[%s1955_s0 + $0x6] sm:$0x1] }
 0x8f9   :  { %579 = vrot.lane.b32.xlu0 %v577_v6, %s1474_s24  ;;  %657 = vrot.lane.b32.xlu2 %v577_v6, %s1475_s25 }
 0x953   :  { %v658_v10 = vpop.permute.xlu2 %657 }
 0x954   :  { %660 = vst.msk [vmem:[#allocation2] sm:$0x3] %vm79_vm3, %v658_v10 }
 0x95b   :  { %v661_v15 = vld [vmem:[#allocation2] sm:$0x3] }
 0x95c   :  { %1283 = vmatmul.msk.f32.vlgmr.msra.gmra.mxu0 %vm82_vm4, %v661_v15  ;;  %800 = vst.msk [vmem:[#allocation2] sm:$0x3] %vm77_vm2, %v798_v14 }
 0x960   :  { %v585_v1 = vpop.permute.xlu1 %584 }
 0x96b   :  { %v580_v16 = vpop.permute.xlu0 %579 }
 0x96c   :  { %582 = vst.msk [vmem:[#allocation3] sm:$0x3] %vm151_vm9, %v580_v16 }
 0x96d   :  { %587 = vst.msk [vmem:[#allocation3] sm:$0x3] %vm153_vm10, %v585_v1 }
 0x974   :  { %v588_v2 = vld [vmem:[#allocation3] sm:$0x3] }
 0x975   :  { %1280 = vmatmul.msk.f32.vlgmr.msrb.gmra.mxu3 %vm156_vm11, %v588_v2 }
 0x976   :  { %1176 = vmatpush.msrb.mxu3 %v1594_v35 }
 0x978   :  { %1177 = vmatpush.msrb.mxu3 %v1596_v36 }
 0x97a   :  { %1178 = vmatpush.msrb.mxu3 %v1600_v37 }
 0x97c   :  { %1179 = vmatpush.msrb.mxu3 %v1611_v40 }
 0x97e   :  { %1180 = vmatpush.msrb.mxu3 %v1615_v41 }
 0x980   :  { %1181 = vmatpush.msrb.mxu3 %v1620_v42 }
 0x982   :  { %1182 = vmatpush.msrb.mxu3 %v1625_v43 }
 0x984   :  { %1183 = vmatpush.msrb.mxu3 %v1630_v44 }
 0x9d9   :  { %v682_v3 = vpop.f32.mrf.mxu0 }
 0x9da   :  { %v683_v7 = vadd.f32 %v1585_v12, %v682_v3 }
 0x9dc   :  { %1369 = vtanh.f32 %v683_v7  ;;  %v1284_v40 = vmul.f32 -1.442695, %v683_v7 }
 0x9e2   :  { %v1370_v17 = vpop.eup %1369 }
 0x9e3   :  { %707 = vrot.lane.b32.xlu2 %v1370_v17, %s1473_s23 }
 0x9f8   :  { %v609_v35 = vpop.f32.mrf.mxu3 }
 0x9f9   :  { %v610_v36 = vadd.f32 %v1689_v57, %v609_v35 }
 0x9fb   :  { %1371 = vtanh.f32 %v610_v36  ;;  %v1281_v27 = vmul.f32 -1.442695, %v610_v36 }
 0x9fc   :  { %1373 = vpow2.f32 %v1284_v40 }
 0xa01   :  { %v1372_v37 = vpop.eup %1371 }
 0xa02   :  { %634 = vrot.lane.b32.xlu0 %v1372_v37, %s1473_s23  ;;  %v1374_v41 = vpop.eup %1373 }
 0xa03   :  { %v688_v42 = vadd.f32 1.0, %v1374_v41 }
 0xa05   :  { %1375 = vrcp.f32 %v688_v42  ;;  %v700_v20 = vand.u32 2147483648, %v688_v42  ;;  %vm694_vm0 = vweird.f32 %v688_v42  ;;  %v698_v21 = vand.u32 2147483647, %v688_v42 }
 0xa06   :  { %1377 = vpow2.f32 %v1281_v27 }
 0xa07   :  { %v701_v23 = vor.u32 1.1754944e-38, %v700_v20  ;;  %vm699_vm13 = vcmp.eq.f32.partialorder %v698_v21, 8.507059e+37 }
 0xa0b   :  { %v1376_v43 = vpop.eup %1375 }
 0xa0c   :  { %v690_v44 = vmul.f32 %v1376_v43, %v688_v42  ;;  %vm695_vm8 = vweird.f32 %v1376_v43  ;;  %v1378_v28 = vpop.eup %1377 }
 0xa0d   :  { %vm696_vm12 = vmor %vm694_vm0, %vm695_vm8  ;;  %v615_v29 = vadd.f32 1.0, %v1378_v28 }
 0xa0e   :  { %v691_v9 = vsub.f32 1.0, %v690_v44 }
 0xa0f   :  { %1379 = vrcp.f32 %v615_v29  ;;  %v627_v39 = vand.u32 2147483648, %v615_v29  ;;  %vm621_vm15 = vweird.f32 %v615_v29  ;;  %v625_v45 = vand.u32 2147483647, %v615_v29 }
 0xa10   :  { %v692_v18 = vmul.f32 %v1376_v43, %v691_v9 }
 0xa11   :  { %v628_v48 = vor.u32 1.1754944e-38, %v627_v39  ;;  %vm626_vm6 = vcmp.eq.f32.partialorder %v625_v45, 8.507059e+37 }
 0xa12   :  { %v693_v19 = vadd.f32 %v1376_v43, %v692_v18 }
 0xa14   :  { %v697_v22 = vsel %vm696_vm12, %v1376_v43, %v693_v19 }
 0xa15   :  { %v702_v25 = vsel %vm699_vm13, %v701_v23, %v697_v22  ;;  %v1380_v30 = vpop.eup %1379 }
 0xa16   :  { %v617_v31 = vmul.f32 %v1380_v30, %v615_v29  ;;  %vm622_vm14 = vweird.f32 %v1380_v30  ;;  %v705_v53 = vmul.f32 %v702_v25, %v1786_v62 }
 0xa17   :  { %vm623_vm5 = vmor %vm621_vm15, %vm622_vm14 }
 0xa18   :  { %v618_v32 = vsub.f32 1.0, %v617_v31 }
 0xa1a   :  { %v619_v34 = vmul.f32 %v1380_v30, %v618_v32 }
 0xa1c   :  { %v620_v38 = vadd.f32 %v1380_v30, %v619_v34 }
 0xa1e   :  { %v624_v46 = vsel %vm623_vm5, %v1380_v30, %v620_v38 }
 0xa1f   :  { %v629_v50 = vsel %vm626_vm6, %v628_v48, %v624_v46 }
 0xa20   :  { %v632_v59 = vmul.f32 %v629_v50, %v1781_v56  ;;  %v938_v56 = vld [vmem:[%s1955_s0 + $0xe] sm:$0x1] }
 0xa21   :  { %v941_v5 = vrot.slane %v938_v56, 7 }
 0xa23   :  { %v942_v6 = vsel %vm74_vm1, %v941_v5, %v937_v51 }
 0xa3d   :  { %v708_v24 = vpop.permute.xlu2 %707 }
 0xa3e   :  { %v710_v26 = vmul.f32 %v708_v24, %v702_v25 }
 0xa40   :  { %712 = vrot.lane.b32.xlu1 %v710_v26, %s1474_s24 }
 0xa74   :  { %v635_v49 = vpop.permute.xlu0 %634 }
 0xa75   :  { %v637_v52 = vmul.f32 %v635_v49, %v629_v50 }
 0xa77   :  { %639 = vrot.lane.b32.xlu2 %v637_v52, %s1474_s24 }
 0xab2   :  { %v713_v54 = vpop.permute.xlu1 %712 }
 0xab3   :  { %v1829_v55 = vadd.f32 %v713_v54, %v705_v53 }
 0xab5   :  { %1381 = vtanh.f32 %v1829_v55 }
 0xabb   :  { %v1382_v33 = vpop.eup %1381 }
 0xabc   :  { %718 = vrot.lane.b32.xlu0 %v1382_v33, %s1473_s23 }
 0xad1   :  { %v640_v60 = vpop.permute.xlu2 %639 }
 0xad2   :  { %v1834_v63 = vadd.f32 %v640_v60, %v632_v59 }
 0xad4   :  { %1383 = vtanh.f32 %v1834_v63 }
 0xada   :  { %v1384_v58 = vpop.eup %1383 }
 0xadb   :  { %645 = vrot.lane.b32.xlu1 %v1384_v58, %s1473_s23 }
 0xb2e   :  { %v719_v47 = vpop.permute.xlu0 %718 }
 0xb2f   :  { %v721_v62 = vmul.f32 %v719_v47, %v702_v25 }
 0xb31   :  { %723 = vrot.lane.b32.xlu0 %v721_v62, %s1474_s24  ;;  %801 = vrot.lane.b32.xlu2 %v721_v62, %s1475_s25  ;;  %v1081_v62 = vld [vmem:[%s1955_s0 + $0x7] sm:$0x1] }
 0xb4d   :  { %v646_v0 = vpop.permute.xlu1 %645 }
 0xb4e   :  { %v648_v4 = vmul.f32 %v646_v0, %v629_v50 }
 0xb50   :  { %728 = vrot.lane.b32.xlu1 %v648_v4, %s1473_s23 }
 0xb8b   :  { %v802_v61 = vpop.permute.xlu2 %801 }
 0xb8c   :  { %804 = vst.msk [vmem:[#allocation2] sm:$0x3] %vm79_vm3, %v802_v61 }
 0xb93   :  { %v805_v8 = vld [vmem:[#allocation2] sm:$0x3] }
 0xb94   :  { %1288 = vmatmul.msk.f32.vlgmr.msra.gmra.mxu2 %vm82_vm4, %v805_v8  ;;  %944 = vst.msk [vmem:[#allocation2] sm:$0x3] %vm77_vm2, %v942_v6  ;;  %v1889_v6 = vld [vmem:[%s1957_s2] ss:$0 sm:$0xff] }
 0xba3   :  { %v724_v10 = vpop.permute.xlu0 %723 }
 0xba4   :  { %726 = vst.msk [vmem:[#allocation3] sm:$0x3] %vm151_vm9, %v724_v10 }
 0xbc2   :  { %v729_v11 = vpop.permute.xlu1 %728 }
 0xbc3   :  { %731 = vst.msk [vmem:[#allocation3] sm:$0x3] %vm153_vm10, %v729_v11 }
 0xbca   :  { %v732_v13 = vld [vmem:[#allocation3] sm:$0x3] }
 0xbcb   :  { %1285 = vmatmul.msk.f32.vlgmr.msra.gmra.mxu1 %vm156_vm11, %v732_v13 }
 0xc17   :  { %v826_v14 = vpop.f32.mrf.mxu2 }
 0xc18   :  { %v827_v15 = vadd.f32 %v1585_v12, %v826_v14 }
 0xc1a   :  { %1385 = vtanh.f32 %v827_v15  ;;  %v1289_v3 = vmul.f32 -1.442695, %v827_v15 }
 0xc20   :  { %v1386_v16 = vpop.eup %1385 }
 0xc21   :  { %851 = vrot.lane.b32.xlu2 %v1386_v16, %s1473_s23 }
 0xc48   :  { %v753_v1 = vpop.f32.mrf.mxu1 }
 0xc49   :  { %v754_v2 = vadd.f32 %v1689_v57, %v753_v1 }
 0xc4b   :  { %1387 = vtanh.f32 %v754_v2  ;;  %v1286_v21 = vmul.f32 -1.442695, %v754_v2 }
 0xc4c   :  { %1389 = vpow2.f32 %v1289_v3 }
 0xc51   :  { %v1388_v7 = vpop.eup %1387 }
 0xc52   :  { %778 = vrot.lane.b32.xlu0 %v1388_v7, %s1473_s23  ;;  %v1390_v17 = vpop.eup %1389 }
 0xc53   :  { %v832_v35 = vadd.f32 1.0, %v1390_v17 }
 0xc55   :  { %1391 = vrcp.f32 %v832_v35  ;;  %v844_v42 = vand.u32 2147483648, %v832_v35  ;;  %vm838_vm8 = vweird.f32 %v832_v35  ;;  %v842_v43 = vand.u32 2147483647, %v832_v35 }
 0xc56   :  { %1393 = vpow2.f32 %v1286_v21 }
 0xc57   :  { %v845_v9 = vor.u32 1.1754944e-38, %v844_v42  ;;  %vm843_vm12 = vcmp.eq.f32.partialorder %v842_v43, 8.507059e+37 }
 0xc5b   :  { %v1392_v36 = vpop.eup %1391 }
 0xc5c   :  { %v834_v37 = vmul.f32 %v1392_v36, %v832_v35  ;;  %vm839_vm7 = vweird.f32 %v1392_v36  ;;  %v1394_v22 = vpop.eup %1393 }
 0xc5d   :  { %vm840_vm0 = vmor %vm838_vm8, %vm839_vm7  ;;  %v759_v23 = vadd.f32 1.0, %v1394_v22 }
 0xc5e   :  { %v835_v40 = vsub.f32 1.0, %v834_v37 }
 0xc5f   :  { %1395 = vrcp.f32 %v759_v23  ;;  %v771_v29 = vand.u32 2147483648, %v759_v23  ;;  %vm765_vm14 = vweird.f32 %v759_v23  ;;  %v769_v30 = vand.u32 2147483647, %v759_v23 }
 0xc60   :  { %v836_v12 = vmul.f32 %v1392_v36, %v835_v40 }
 0xc61   :  { %v772_v32 = vor.u32 1.1754944e-38, %v771_v29  ;;  %vm770_vm5 = vcmp.eq.f32.partialorder %v769_v30, 8.507059e+37 }
 0xc62   :  { %v837_v41 = vadd.f32 %v1392_v36, %v836_v12 }
 0xc64   :  { %v841_v44 = vsel %vm840_vm0, %v1392_v36, %v837_v41 }
 0xc65   :  { %v846_v19 = vsel %vm843_vm12, %v845_v9, %v841_v44  ;;  %v1396_v24 = vpop.eup %1395 }
 0xc66   :  { %v761_v25 = vmul.f32 %v1396_v24, %v759_v23  ;;  %vm766_vm13 = vweird.f32 %v1396_v24  ;;  %v849_v45 = vmul.f32 %v846_v19, %v1829_v55 }
 0xc67   :  { %vm767_vm15 = vmor %vm765_vm14, %vm766_vm13 }
 0xc68   :  { %v762_v26 = vsub.f32 1.0, %v761_v25 }
 0xc6a   :  { %v763_v27 = vmul.f32 %v1396_v24, %v762_v26 }
 0xc6c   :  { %v764_v28 = vadd.f32 %v1396_v24, %v763_v27 }
 0xc6e   :  { %v768_v31 = vsel %vm767_vm15, %v1396_v24, %v764_v28 }
 0xc6f   :  { %v773_v38 = vsel %vm770_vm5, %v772_v32, %v768_v31 }
 0xc70   :  { %v776_v50 = vmul.f32 %v773_v38, %v1834_v63  ;;  %v1082_v63 = vld [vmem:[%s1955_s0 + $0xf] sm:$0x1] }
 0xc71   :  { %v1085_v47 = vrot.slane %v1082_v63, 7 }
 0xc73   :  { %v1086_v0 = vsel %vm74_vm1, %v1085_v47, %v1081_v62 }
 0xc7b   :  { %v852_v18 = vpop.permute.xlu2 %851 }
 0xc7c   :  { %v854_v20 = vmul.f32 %v852_v18, %v846_v19 }
 0xc7e   :  { %856 = vrot.lane.b32.xlu1 %v854_v20, %s1474_s24 }
 0xcc4   :  { %v779_v34 = vpop.permute.xlu0 %778 }
 0xcc5   :  { %v781_v39 = vmul.f32 %v779_v34, %v773_v38 }
 0xcc7   :  { %783 = vrot.lane.b32.xlu2 %v781_v39, %s1474_s24 }
 0xcf0   :  { %v857_v46 = vpop.permute.xlu1 %856 }
 0xcf1   :  { %v1861_v48 = vadd.f32 %v857_v46, %v849_v45 }
 0xcf3   :  { %1397 = vtanh.f32 %v1861_v48 }
 0xcf9   :  { %v1398_v49 = vpop.eup %1397 }
 0xcfa   :  { %862 = vrot.lane.b32.xlu0 %v1398_v49, %s1473_s23 }
 0xd21   :  { %v784_v52 = vpop.permute.xlu2 %783 }
 0xd22   :  { %v1866_v53 = vadd.f32 %v784_v52, %v776_v50 }
 0xd24   :  { %1399 = vtanh.f32 %v1866_v53 }
 0xd2a   :  { %v1400_v54 = vpop.eup %1399 }
 0xd2b   :  { %789 = vrot.lane.b32.xlu1 %v1400_v54, %s1473_s23 }
 0xd6c   :  { %v863_v33 = vpop.permute.xlu0 %862 }
 0xd6d   :  { %v865_v55 = vmul.f32 %v863_v33, %v846_v19 }
 0xd6f   :  { %867 = vrot.lane.b32.xlu0 %v865_v55, %s1474_s24  ;;  %945 = vrot.lane.b32.xlu2 %v865_v55, %s1475_s25 }
 0xd9d   :  { %v790_v59 = vpop.permute.xlu1 %789 }
 0xd9e   :  { %v792_v60 = vmul.f32 %v790_v59, %v773_v38 }
 0xda0   :  { %872 = vrot.lane.b32.xlu1 %v792_v60, %s1473_s23 }
 0xdc9   :  { %v946_v58 = vpop.permute.xlu2 %945 }
 0xdca   :  { %948 = vst.msk [vmem:[#allocation2] sm:$0x3] %vm79_vm3, %v946_v58 }
 0xdd1   :  { %v949_v4 = vld [vmem:[#allocation2] sm:$0x3] }
 0xdd2   :  { %1293 = vmatmul.msk.f32.vlgmr.msra.gmra.mxu3 %vm82_vm4, %v949_v4  ;;  %1088 = vst.msk [vmem:[#allocation2] sm:$0x3] %vm77_vm2, %v1086_v0 }
 0xde1   :  { %v868_v56 = vpop.permute.xlu0 %867 }
 0xde2   :  { %870 = vst.msk [vmem:[#allocation3] sm:$0x3] %vm151_vm9, %v868_v56  ;;  %v1920_v56 = vld [vmem:[%s1959_s4] ss:$0 sm:$0xff] }
 0xe12   :  { %v873_v61 = vpop.permute.xlu1 %872 }
 0xe13   :  { %875 = vst.msk [vmem:[#allocation3] sm:$0x3] %vm153_vm10, %v873_v61 }
 0xe1a   :  { %v876_v5 = vld [vmem:[#allocation3] sm:$0x3] }
 0xe1b   :  { %1290 = vmatmul.msk.f32.vlgmr.msrb.gmra.mxu0 %vm156_vm11, %v876_v5 }
 0xe55   :  { %v970_v51 = vpop.f32.mrf.mxu3 }
 0xe56   :  { %v971_v8 = vadd.f32 %v1889_v6, %v970_v51 }
 0xe58   :  { %1401 = vtanh.f32 %v971_v8  ;;  %v1294_v11 = vmul.f32 -1.442695, %v971_v8 }
 0xe5a   :  { %1403 = vpow2.f32 %v1294_v11 }
 0xe5e   :  { %v1402_v10 = vpop.eup %1401 }
 0xe5f   :  { %995 = vrot.lane.b32.xlu2 %v1402_v10, %s1473_s23 }
 0xe60   :  { %v1404_v13 = vpop.eup %1403 }
 0xe61   :  { %v976_v15 = vadd.f32 1.0, %v1404_v13 }
 0xe63   :  { %v988_v36 = vand.u32 2147483648, %v976_v15  ;;  %vm982_vm2 = vweird.f32 %v976_v15  ;;  %v986_v37 = vand.u32 2147483647, %v976_v15 }
 0xe65   :  { %v989_v12 = vor.u32 1.1754944e-38, %v988_v36  ;;  %vm987_vm7 = vcmp.eq.f32.partialorder %v986_v37, 8.507059e+37 }
 0xe98   :  { %v897_v14 = vpop.f32.mrf.mxu0 }
 0xe99   :  { %v898_v16 = vadd.f32 %v1689_v57, %v897_v14 }
 0xe9b   :  { %1405 = vtanh.f32 %v898_v16  ;;  %v1291_v43 = vmul.f32 -1.442695, %v898_v16 }
 0xe9c   :  { %1407 = vrcp.f32 %v976_v15 }
 0xe9d   :  { %1409 = vpow2.f32 %v1291_v43 }
 0xea1   :  { %v1406_v1 = vpop.eup %1405 }
 0xea2   :  { %922 = vrot.lane.b32.xlu0 %v1406_v1, %s1473_s23  ;;  %v1408_v2 = vpop.eup %1407 }
 0xea3   :  { %v978_v3 = vmul.f32 %v1408_v2, %v976_v15  ;;  %vm983_vm1 = vweird.f32 %v1408_v2  ;;  %v1410_v44 = vpop.eup %1409 }
 0xea4   :  { %vm984_vm6 = vmor %vm982_vm2, %vm983_vm1  ;;  %v903_v9 = vadd.f32 1.0, %v1410_v44 }
 0xea5   :  { %v979_v7 = vsub.f32 1.0, %v978_v3 }
 0xea6   :  { %1411 = vrcp.f32 %v903_v9  ;;  %v915_v23 = vand.u32 2147483648, %v903_v9  ;;  %vm909_vm0 = vweird.f32 %v903_v9  ;;  %v913_v24 = vand.u32 2147483647, %v903_v9 }
 0xea7   :  { %v980_v17 = vmul.f32 %v1408_v2, %v979_v7 }
 0xea8   :  { %v916_v26 = vor.u32 1.1754944e-38, %v915_v23  ;;  %vm914_vm13 = vcmp.eq.f32.partialorder %v913_v24, 8.507059e+37 }
 0xea9   :  { %v981_v35 = vadd.f32 %v1408_v2, %v980_v17 }
 0xeab   :  { %v985_v40 = vsel %vm984_vm6, %v1408_v2, %v981_v35 }
 0xeac   :  { %v990_v57 = vsel %vm987_vm7, %v989_v12, %v985_v40  ;;  %v1412_v18 = vpop.eup %1411 }
 0xead   :  { %v905_v19 = vmul.f32 %v1412_v18, %v903_v9  ;;  %vm910_vm8 = vweird.f32 %v1412_v18  ;;  %v993_v30 = vmul.f32 %v990_v57, %v1861_v48 }
 0xeae   :  { %vm911_vm12 = vmor %vm909_vm0, %vm910_vm8  ;;  %vm1232_vm8 = vcmask 261120   ;;  %vm1255_vm0 = vcmask 1024  }
 0xeaf   :  { %v906_v20 = vsub.f32 1.0, %v905_v19 }
 0xeb1   :  { %v907_v21 = vmul.f32 %v1412_v18, %v906_v20 }
 0xeb3   :  { %v908_v22 = vadd.f32 %v1412_v18, %v907_v21 }
 0xeb5   :  { %v912_v25 = vsel %vm911_vm12, %v1412_v18, %v908_v22 }
 0xeb6   :  { %v917_v28 = vsel %vm914_vm13, %v916_v26, %v912_v25 }
 0xeb7   :  { %v920_v38 = vmul.f32 %v917_v28, %v1866_v53 }
 0xeb9   :  { %v996_v41 = vpop.permute.xlu2 %995 }
 0xeba   :  { %v998_v42 = vmul.f32 %v996_v41, %v990_v57 }
 0xebc   :  { %1000 = vrot.lane.b32.xlu1 %v998_v42, %s1474_s24 }
 0xf14   :  { %v923_v27 = vpop.permute.xlu0 %922 }
 0xf15   :  { %v925_v29 = vmul.f32 %v923_v27, %v917_v28 }
 0xf17   :  { %927 = vrot.lane.b32.xlu2 %v925_v29, %s1474_s24 }
 0xf2e   :  { %v1001_v31 = vpop.permute.xlu1 %1000 }
 0xf2f   :  { %v1898_v32 = vadd.f32 %v1001_v31, %v993_v30 }
 0xf31   :  { %1413 = vtanh.f32 %v1898_v32 }
 0xf37   :  { %v1414_v34 = vpop.eup %1413 }
 0xf38   :  { %1006 = vrot.lane.b32.xlu0 %v1414_v34, %s1473_s23 }
 0xf71   :  { %v928_v39 = vpop.permute.xlu2 %927 }
 0xf72   :  { %v1903_v45 = vadd.f32 %v928_v39, %v920_v38 }
 0xf74   :  { %1415 = vtanh.f32 %v1903_v45 }
 0xf7a   :  { %v1416_v46 = vpop.eup %1415 }
 0xf7b   :  { %933 = vrot.lane.b32.xlu1 %v1416_v46, %s1473_s23 }
 0xfaa   :  { %v1007_v49 = vpop.permute.xlu0 %1006 }
 0xfab   :  { %v1009_v48 = vmul.f32 %v1007_v49, %v990_v57 }
 0xfad   :  { %1089 = vrot.lane.b32.xlu1 %v1009_v48, %s1475_s25  ;;  %1011 = vrot.lane.b32.xlu2 %v1009_v48, %s1474_s24 }
 0xfed   :  { %v934_v50 = vpop.permute.xlu1 %933 }
 0xfee   :  { %v936_v52 = vmul.f32 %v934_v50, %v917_v28 }
 0xff0   :  { %1016 = vrot.lane.b32.xlu0 %v936_v52, %s1473_s23 }
0x1007   :  { %v1012_v54 = vpop.permute.xlu2 %1011 }
0x1008   :  { %1014 = vst.msk [vmem:[#allocation3] sm:$0x3] %vm151_vm9, %v1012_v54 }
0x101f   :  { %v1090_v53 = vpop.permute.xlu1 %1089 }
0x1020   :  { %1092 = vst.msk [vmem:[#allocation2] sm:$0x3] %vm79_vm3, %v1090_v53 }
0x1027   :  { %v1093_v33 = vld [vmem:[#allocation2] sm:$0x3] }
0x1028   :  { %1298 = vmatmul.msk.f32.vlgmr.msrb.gmra.mxu1 %vm82_vm4, %v1093_v33 }
0x1062   :  { %v1017_v55 = vpop.permute.xlu0 %1016 }
0x1063   :  { %1019 = vst.msk [vmem:[#allocation3] sm:$0x3] %vm153_vm10, %v1017_v55 }
0x106a   :  { %v1020_v59 = vld [vmem:[#allocation3] sm:$0x3] }
0x106b   :  { %1295 = vmatmul.msk.f32.vlgmr.msrb.gmra.mxu2 %vm156_vm11, %v1020_v59 }
0x10a5   :  { %v1114_v60 = vpop.f32.mrf.mxu1 }
0x10a6   :  { %v1115_v63 = vadd.f32 %v1889_v6, %v1114_v60 }
0x10a8   :  { %1417 = vtanh.f32 %v1115_v63  ;;  %v1299_v47 = vmul.f32 -1.442695, %v1115_v63 }
0x10aa   :  { %1419 = vpow2.f32 %v1299_v47 }
0x10ae   :  { %v1418_v58 = vpop.eup %1417 }
0x10af   :  { %1139 = vrot.lane.b32.xlu2 %v1418_v58, %s1473_s23 }
0x10b0   :  { %v1420_v62 = vpop.eup %1419 }
0x10b1   :  { %v1120_v0 = vadd.f32 1.0, %v1420_v62 }
0x10b3   :  { %1421 = vrcp.f32 %v1120_v0  ;;  %v1132_v13 = vand.u32 2147483648, %v1120_v0  ;;  %vm1126_vm4 = vweird.f32 %v1120_v0  ;;  %v1130_v14 = vand.u32 2147483647, %v1120_v0 }
0x10b5   :  { %v1133_v16 = vor.u32 1.1754944e-38, %v1132_v13  ;;  %vm1131_vm15 = vcmp.eq.f32.partialorder %v1130_v14, 8.507059e+37 }
0x10b9   :  { %v1422_v5 = vpop.eup %1421 }
0x10ba   :  { %v1122_v51 = vmul.f32 %v1422_v5, %v1120_v0  ;;  %vm1127_vm3 = vweird.f32 %v1422_v5 }
0x10bb   :  { %vm1128_vm14 = vmor %vm1126_vm4, %vm1127_vm3 }
0x10bc   :  { %v1123_v8 = vsub.f32 1.0, %v1122_v51  ;;  %v60_v51 = vld [vmem:[%s1960_s5 + $0x18] sm:$0xff] }
0x10bd   :  { %1247 = vmatpush.msra.mxu0 %v60_v51 }
0x10be   :  { %v1124_v10 = vmul.f32 %v1422_v5, %v1123_v8  ;;  %v58_v8 = vld [vmem:[%s1960_s5 + $0x8] sm:$0xff] }
0x10c0   :  { %v1125_v11 = vadd.f32 %v1422_v5, %v1124_v10  ;;  %v57_v10 = vld [vmem:[%s1960_s5] sm:$0xff] }
0x10c2   :  { %v1129_v15 = vsel %vm1128_vm14, %v1422_v5, %v1125_v11 }
0x10c3   :  { %v1134_v2 = vsel %vm1131_vm15, %v1133_v16, %v1129_v15  ;;  %v1312_v15 = vld [vmem:[#allocation4] ss:$0 sm:$0xff] }
0x10c4   :  { %v1137_v20 = vmul.f32 %v1134_v2, %v1898_v32 }
0x10ee   :  { %v1041_v4 = vpop.f32.mrf.mxu2 }
0x10ef   :  { %v1042_v61 = vadd.f32 %v1920_v56, %v1041_v4 }
0x10f1   :  { %1423 = vtanh.f32 %v1042_v61  ;;  %v1296_v7 = vmul.f32 -1.442695, %v1042_v61 }
0x10f3   :  { %1425 = vpow2.f32 %v1296_v7 }
0x10f7   :  { %v1424_v6 = vpop.eup %1423 }
0x10f8   :  { %1066 = vrot.lane.b32.xlu0 %v1424_v6, %s1473_s23  ;;  %v59_v6 = vld [vmem:[%s1960_s5 + $0x10] sm:$0xff] }
0x10f9   :  { %v1426_v17 = vpop.eup %1425  ;;  %1248 = vmatpush.msra.mxu0 %v59_v6 }
0x10fa   :  { %v1047_v35 = vadd.f32 1.0, %v1426_v17 }
0x10fb   :  { %1249 = vmatpush.msra.mxu0 %v58_v8 }
0x10fc   :  { %1427 = vrcp.f32 %v1047_v35  ;;  %v1059_v57 = vand.u32 2147483648, %v1047_v35  ;;  %vm1053_vm1 = vweird.f32 %v1047_v35  ;;  %v1057_v42 = vand.u32 2147483647, %v1047_v35 }
0x10fd   :  { %1250 = vmatpush.msra.mxu0 %v57_v10 }
0x10fe   :  { %v1060_v44 = vor.u32 1.1754944e-38, %v1059_v57  ;;  %vm1058_vm6 = vcmp.eq.f32.partialorder %v1057_v42, 8.507059e+37 }
0x1102   :  { %v1428_v36 = vpop.eup %1427 }
0x1103   :  { %v1049_v37 = vmul.f32 %v1428_v36, %v1047_v35  ;;  %vm1054_vm5 = vweird.f32 %v1428_v36 }
0x1104   :  { %vm1055_vm2 = vmor %vm1053_vm1, %vm1054_vm5 }
0x1105   :  { %v1050_v40 = vsub.f32 1.0, %v1049_v37 }
0x1107   :  { %v1051_v12 = vmul.f32 %v1428_v36, %v1050_v40 }
0x1109   :  { %v1140_v1 = vpop.permute.xlu2 %1139  ;;  %v1052_v41 = vadd.f32 %v1428_v36, %v1051_v12 }
0x110a   :  { %v1142_v3 = vmul.f32 %v1140_v1, %v1134_v2 }
0x110b   :  { %v1056_v43 = vsel %vm1055_vm2, %v1428_v36, %v1052_v41 }
0x110c   :  { %1144 = vrot.lane.b32.xlu1 %v1142_v3, %s1474_s24  ;;  %v1061_v18 = vsel %vm1058_vm6, %v1060_v44, %v1056_v43 }
0x110d   :  { %v1064_v24 = vmul.f32 %v1061_v18, %v1903_v45 }
0x116a   :  { %v1067_v9 = vpop.permute.xlu0 %1066 }
0x116b   :  { %v1069_v19 = vmul.f32 %v1067_v9, %v1061_v18 }
0x116d   :  { %1071 = vrot.lane.b32.xlu2 %v1069_v19, %s1474_s24 }
0x117e   :  { %v1145_v21 = vpop.permute.xlu1 %1144 }
0x117f   :  { %v1147_v22 = vadd.f32 %v1145_v21, %v1137_v20 }
0x1181   :  { %1429 = vtanh.f32 %v1147_v22 }
0x1187   :  { %v1430_v23 = vpop.eup %1429 }
0x1188   :  { %1150 = vrot.lane.b32.xlu0 %v1430_v23, %s1473_s23 }
0x11c7   :  { %v1072_v25 = vpop.permute.xlu2 %1071 }
0x11c8   :  { %v1074_v26 = vadd.f32 %v1072_v25, %v1064_v24 }
0x11ca   :  { %1431 = vtanh.f32 %v1074_v26 }
0x11d0   :  { %v1432_v27 = vpop.eup %1431 }
0x11d1   :  { %1077 = vrot.lane.b32.xlu1 %v1432_v27, %s1473_s23 }
0x11fa   :  { %v1151_v28 = vpop.permute.xlu0 %1150 }
0x11fb   :  { %v1153_v29 = vmul.f32 %v1151_v28, %v1134_v2 }
0x11fd   :  { %1155 = vrot.lane.b32.xlu2 %v1153_v29, %s1474_s24 }
0x1243   :  { %v1078_v30 = vpop.permute.xlu1 %1077 }
0x1244   :  { %v1080_v31 = vmul.f32 %v1078_v30, %v1061_v18 }
0x1246   :  { %1160 = vrot.lane.b32.xlu0 %v1080_v31, %s1473_s23 }
0x1257   :  { %v1156_v32 = vpop.permute.xlu2 %1155 }
0x1258   :  { %1158 = vst.msk [vmem:[#allocation3] sm:$0x3] %vm151_vm9, %v1156_v32 }
0x12b8   :  { %v1161_v34 = vpop.permute.xlu0 %1160 }
0x12b9   :  { %1163 = vst.msk [vmem:[#allocation3] sm:$0x3] %vm153_vm10, %v1161_v34 }
0x12c0   :  { %v1164_v38 = vld [vmem:[#allocation3] sm:$0x3] }
0x12c1   :  { %1300 = vmatmul.msk.f32.vlgmr.msrb.gmra.mxu3 %vm156_vm11, %v1164_v38 }
0x1344   :  { %v1185_v39 = vpop.f32.mrf.mxu3 }
0x1345   :  { %v1186_v45 = vadd.f32 %v1920_v56, %v1185_v39 }
0x1347   :  { %1433 = vtanh.f32 %v1186_v45  ;;  %v1301_v49 = vmul.f32 -1.442695, %v1186_v45 }
0x1349   :  { %1435 = vpow2.f32 %v1301_v49 }
0x134d   :  { %v1434_v46 = vpop.eup %1433 }
0x134e   :  { %1210 = vrot.lane.b32.xlu1 %v1434_v46, %s1473_s23 }
0x134f   :  { %v1436_v48 = vpop.eup %1435 }
0x1350   :  { %v1191_v50 = vadd.f32 1.0, %v1436_v48 }
0x1352   :  { %1437 = vrcp.f32 %v1191_v50  ;;  %v1203_v59 = vand.u32 2147483648, %v1191_v50  ;;  %vm1197_vm10 = vweird.f32 %v1191_v50  ;;  %v1201_v60 = vand.u32 2147483647, %v1191_v50 }
0x1354   :  { %v1204_v58 = vor.u32 1.1754944e-38, %v1203_v59  ;;  %vm1202_vm7 = vcmp.eq.f32.partialorder %v1201_v60, 8.507059e+37 }
0x1358   :  { %v1438_v52 = vpop.eup %1437 }
0x1359   :  { %v1193_v54 = vmul.f32 %v1438_v52, %v1191_v50  ;;  %vm1198_vm9 = vweird.f32 %v1438_v52 }
0x135a   :  { %vm1199_vm11 = vmor %vm1197_vm10, %vm1198_vm9 }
0x135b   :  { %v1194_v53 = vsub.f32 1.0, %v1193_v54 }
0x135d   :  { %v1195_v33 = vmul.f32 %v1438_v52, %v1194_v53 }
0x135f   :  { %v1196_v55 = vadd.f32 %v1438_v52, %v1195_v33 }
0x1361   :  { %v1200_v63 = vsel %vm1199_vm11, %v1438_v52, %v1196_v55 }
0x1362   :  { %v1205_v62 = vsel %vm1202_vm7, %v1204_v58, %v1200_v63 }
0x1363   :  { %v1208_v4 = vmul.f32 %v1205_v62, %v1074_v26 }
0x13c0   :  { %v1211_v47 = vpop.permute.xlu1 %1210 }
0x13c1   :  { %v1213_v0 = vmul.f32 %v1211_v47, %v1205_v62 }
0x13c3   :  { %1215 = vrot.lane.b32.xlu2 %v1213_v0, %s1474_s24 }
0x141d   :  { %v1216_v56 = vpop.permute.xlu2 %1215 }
0x141e   :  { %v1218_v61 = vadd.f32 %v1216_v56, %v1208_v4 }
0x1420   :  { %1439 = vtanh.f32 %v1218_v61 }
0x1426   :  { %v1440_v5 = vpop.eup %1439 }
0x1427   :  { %1221 = vrot.lane.b32.xlu0 %v1440_v5, %s1473_s23 }
0x1499   :  { %v1222_v11 = vpop.permute.xlu0 %1221 }
0x149a   :  { %v1224_v13 = vmul.f32 %v1222_v11, %v1205_v62 }
0x149c   :  { %1230 = vrot.lane.b32.xlu1 %v1224_v13, %s1474_s24 }
0x150e   :  { %v1231_v14 = vpop.permute.xlu1 %1230 }
0x150f   :  { %1302 = vmatmul.msk.f32.vlgmr.msra.gmra.mxu0 %vm1232_vm8, %v1231_v14 }
0x158c   :  { %v1252_v16 = vpop.f32.mrf.mxu0 }
0x158d   :  { %v1253_v1 = vadd.f32 %v1312_v15, %v1252_v16 }
0x158f   :  { %1256 = vst.msk [vmem:[%s1962_s7] sm:$0x3] %vm1255_vm0, %v1253_v1 }
0x1590   :  { %1261 = vsyncpa [#allocation6], 1 }

</bundles_post_ra>
